<compile_context>
chip_gen: v7x
topology: tpu7x:2x2x1
jax: 0.10.0
libtpu: 0.0.40
codegen_flags: <defaults>
</compile_context>

<pallas_src>
import jax
import jax.numpy as jnp
from jax.experimental import pallas as pl
from jax.experimental.pallas import tpu as pltpu

GATE_PAD = 128  # lane width per gate block (one vreg lane extent)


def mv_lstm_kernel(x_ref, w_ih_ref, w_hh_ref, bias_ref, w_lin_ref, b_lin_ref,
                   out_ref):
    """Whole forward pass: LSTM over seq + flattened Linear.

    x_ref     : (S*B, F)    seq-major rows (row index = t*B + b), float32
    w_ih_ref  : (F, 4*GP)   input->gates, gate order [i, f, o, g], lane-padded
    w_hh_ref  : (GP, 4*GP)  hidden->gates, hidden dim zero-padded to GP rows
    bias_ref  : (1, 4*GP)   b_ih + b_hh, same gate layout
    w_lin_ref : (S, GP)     final linear weight rows, lane-padded with zeros
    b_lin_ref : (1, 1)
    out_ref   : (B, 1)
    """
    SB, _ = x_ref.shape
    GP = w_hh_ref.shape[0]
    S = w_lin_ref.shape[0]
    B = SB // S

    w_hh = w_hh_ref[...]          # (GP, 4*GP) -- kept resident across the loop
    w_lin = w_lin_ref[...]        # (S, GP)

    # Hoisted input projection (+ folded bias): one matmul for all timesteps,
    # entirely off the recurrent critical chain.
    xg = (jnp.dot(x_ref[...], w_ih_ref[...], preferred_element_type=jnp.float32)
          + bias_ref[...])                                        # (S*B, 4*GP)

    h = jnp.zeros((B, GP), jnp.float32)
    c = jnp.zeros((B, GP), jnp.float32)
    acc = jnp.zeros((B, GP), jnp.float32)   # per-lane partials of the Linear

    # seq_len is small and static -> fully unrolled recurrence (LLO visibility).
    for t in range(S):
        gates = xg[t * B:(t + 1) * B, :] + jnp.dot(
            h, w_hh, preferred_element_type=jnp.float32)          # (B, 4*GP)
        # Gate blocks are 128-lane aligned: [ i | f | o | g ].
        sig = jax.nn.sigmoid(gates[:, :3 * GP])   # single EUP call for i, f, o
        i_g = sig[:, 0:GP]
        f_g = sig[:, GP:2 * GP]
        o_g = sig[:, 2 * GP:3 * GP]
        g_g = jnp.tanh(gates[:, 3 * GP:4 * GP])
        c = f_g * c + i_g * g_g
        h = o_g * jnp.tanh(c)
        # Deferred Linear: elementwise accumulate only (VPU); reduce once later.
        acc = acc + h * w_lin[t:t + 1, :]

    out_ref[...] = jnp.sum(acc, axis=-1, keepdims=True) + b_lin_ref[...]


def _pack_gate_cols(w, H, GP):
    """(4H, K) PyTorch order [i,f,g,o] -> (K, 4*GP) order [i,f,o,g], lane-padded."""
    K = w.shape[1]
    blocks = (w[0:H], w[H:2 * H], w[3 * H:4 * H], w[2 * H:3 * H])  # i, f, o, g
    out = jnp.zeros((K, 4 * GP), jnp.float32)
    for blk, wg in enumerate(blocks):
        out = out.at[:, blk * GP:blk * GP + H].set(wg.T)
    return out


def _pack_gate_bias(b, H, GP):
    blocks = (b[0:H], b[H:2 * H], b[3 * H:4 * H], b[2 * H:3 * H])  # i, f, o, g
    out = jnp.zeros((1, 4 * GP), jnp.float32)
    for blk, bg in enumerate(blocks):
        out = out.at[0, blk * GP:blk * GP + H].set(bg)
    return out


def mv_lstm_forward(x, params, gate_pad=GATE_PAD):
    B, S, F = x.shape
    H = params["w_hh"].shape[1]
    GP = gate_pad
    assert H <= GP

    # Wrapper-side layout plumbing (free relative to the kernel):
    #  - seq-major x so each timestep of the hoisted projection is a contiguous
    #    row block,
    #  - gates reordered to [i, f, o, g] and each lane-padded to 128,
    #  - hidden dim of w_hh zero-padded to 128 rows,
    #  - final linear weight reshaped to (S, H) and lane-padded.
    x_sb = jnp.transpose(x, (1, 0, 2)).reshape(S * B, F)

    w_ih_pad = _pack_gate_cols(params["w_ih"], H, GP)                 # (F, 4*GP)
    w_hh_cols = _pack_gate_cols(params["w_hh"], H, GP)                # (H, 4*GP)
    w_hh_pad = jnp.zeros((GP, 4 * GP), jnp.float32).at[:H, :].set(w_hh_cols)
    bias_pad = _pack_gate_bias(params["b_ih"] + params["b_hh"], H, GP)
    w_lin_pad = jnp.zeros((S, GP), jnp.float32).at[:, :H].set(
        params["w_lin"].reshape(S, H))
    b_lin = params["b_lin"].reshape(1, 1)

    # Single invocation, everything resident in VMEM (total < 1 MiB).
    # TODO(synk): if batch scales up, add grid=(B//TB,) over batch with
    # dimension_semantics=("parallel",) to use both v7x TensorCores.
    return pl.pallas_call(
        mv_lstm_kernel,
        out_shape=jax.ShapeDtypeStruct((B, 1), jnp.float32),
        in_specs=[pl.BlockSpec(memory_space=pltpu.MemorySpace.VMEM)] * 6,
        out_specs=pl.BlockSpec(memory_space=pltpu.MemorySpace.VMEM),
    )(x_sb, w_ih_pad, w_hh_pad, bias_pad, w_lin_pad, b_lin)


def init_params(key, n_features, seq_length, n_hidden):
    """Deterministic init mirroring PyTorch's default LSTM / Linear init."""
    k_lstm = 1.0 / jnp.sqrt(n_hidden)
    k_lin = 1.0 / jnp.sqrt(n_hidden * seq_length)
    keys = jax.random.split(key, 6)
    return {
        "w_ih": jax.random.uniform(keys[0], (4 * n_hidden, n_features),
                                   jnp.float32, -k_lstm, k_lstm),
        "w_hh": jax.random.uniform(keys[1], (4 * n_hidden, n_hidden),
                                   jnp.float32, -k_lstm, k_lstm),
        "b_ih": jax.random.uniform(keys[2], (4 * n_hidden,),
                                   jnp.float32, -k_lstm, k_lstm),
        "b_hh": jax.random.uniform(keys[3], (4 * n_hidden,),
                                   jnp.float32, -k_lstm, k_lstm),
        "w_lin": jax.random.uniform(keys[4], (1, n_hidden * seq_length),
                                    jnp.float32, -k_lin, k_lin),
        "b_lin": jax.random.uniform(keys[5], (1,),
                                    jnp.float32, -k_lin, k_lin),
    }


def reference_forward(x, params):
    """Pure-JAX reference (PyTorch LSTM semantics, unpadded) for verification."""
    B, S, F = x.shape
    H = params["w_hh"].shape[1]
    h = jnp.zeros((B, H), jnp.float32)
    c = jnp.zeros((B, H), jnp.float32)
    outs = []
    for t in range(S):
        gates = (x[:, t, :] @ params["w_ih"].T + h @ params["w_hh"].T
                 + params["b_ih"] + params["b_hh"])
        i_g = jax.nn.sigmoid(gates[:, 0:H])
        f_g = jax.nn.sigmoid(gates[:, H:2 * H])
        g_g = jnp.tanh(gates[:, 2 * H:3 * H])
        o_g = jax.nn.sigmoid(gates[:, 3 * H:4 * H])
        c = f_g * c + i_g * g_g
        h = o_g * jnp.tanh(c)
        outs.append(h)
    lstm_out = jnp.stack(outs, axis=1).reshape(B, S * H)
    return lstm_out @ params["w_lin"].T + params["b_lin"]


if __name__ == "__main__":
    batch, seq_len, n_features, n_hidden = 2, 8, 4, 20

    key = jax.random.PRNGKey(0)
    k_x, k_p = jax.random.split(key)
    x = jax.random.normal(k_x, (batch, seq_len, n_features), jnp.float32)
    params = init_params(k_p, n_features, seq_len, n_hidden)

    out = mv_lstm_forward(x, params)
    out = jax.block_until_ready(out)

    ref = reference_forward(x, params)
    assert out.shape == (batch, 1), out.shape
    assert jnp.allclose(out, ref, atol=1e-4, rtol=1e-4), (out, ref)

    print("KERNEL_OK")
</pallas_src>

<mosaic_0001>
module attributes {stable_mosaic.version = 11 : i64} {
  func.func @mv_lstm_kernel(%arg0: memref<16x4xf32, #tpu.memory_space<vmem>>, %arg1: memref<4x512xf32, #tpu.memory_space<vmem>>, %arg2: memref<128x512xf32, #tpu.memory_space<vmem>>, %arg3: memref<1x512xf32, #tpu.memory_space<vmem>>, %arg4: memref<8x128xf32, #tpu.memory_space<vmem>>, %arg5: memref<1x1xf32, #tpu.memory_space<vmem>>, %arg6: memref<2x1xf32, #tpu.memory_space<vmem>>) attributes {dimension_semantics = [], scalar_prefetch = 0 : i64, scratch_operands = 0 : i64, tpu.core_type = #tpu.core_type<tc>} {
    %c0 = arith.constant 0 : index
    %c0_0 = arith.constant 0 : index
    %0 = vector.load %arg2[%c0, %c0_0] : memref<128x512xf32, #tpu.memory_space<vmem>>, vector<128x512xf32>
    %c0_1 = arith.constant 0 : index
    %c0_2 = arith.constant 0 : index
    %1 = vector.load %arg4[%c0_1, %c0_2] : memref<8x128xf32, #tpu.memory_space<vmem>>, vector<8x128xf32>
    %c0_3 = arith.constant 0 : index
    %c0_4 = arith.constant 0 : index
    %2 = vector.load %arg0[%c0_3, %c0_4] : memref<16x4xf32, #tpu.memory_space<vmem>>, vector<16x4xf32>
    %c0_5 = arith.constant 0 : index
    %c0_6 = arith.constant 0 : index
    %3 = vector.load %arg1[%c0_5, %c0_6] : memref<4x512xf32, #tpu.memory_space<vmem>>, vector<4x512xf32>
    %cst = arith.constant dense<0.000000e+00> : vector<16x512xf32>
    %4 = tpu.matmul %2, %3, %cst {dimension_numbers = #tpu.dot_dimension_numbers<[1], [0], [0], [1], [0, 0, 1, 1], [], []>} : vector<16x4xf32>, vector<4x512xf32>, vector<16x512xf32> -> vector<16x512xf32>
    %c0_7 = arith.constant 0 : index
    %c0_8 = arith.constant 0 : index
    %5 = vector.load %arg3[%c0_7, %c0_8] : memref<1x512xf32, #tpu.memory_space<vmem>>, vector<1x512xf32>
    %6 = vector.broadcast %5 : vector<1x512xf32> to vector<16x512xf32>
    %7 = arith.addf %4, %6 : vector<16x512xf32>
    %cst_9 = arith.constant 0.000000e+00 : f32
    %8 = vector.broadcast %cst_9 : f32 to vector<2x128xf32>
    %cst_10 = arith.constant 0.000000e+00 : f32
    %9 = vector.broadcast %cst_10 : f32 to vector<2x128xf32>
    %cst_11 = arith.constant 0.000000e+00 : f32
    %10 = vector.broadcast %cst_11 : f32 to vector<2x128xf32>
    %11 = vector.extract_strided_slice %7 {offsets = [0, 0], sizes = [2, 512], strides = [1, 1]} : vector<16x512xf32> to vector<2x512xf32>
    %cst_12 = arith.constant dense<0.000000e+00> : vector<2x512xf32>
    %12 = tpu.matmul %8, %0, %cst_12 {dimension_numbers = #tpu.dot_dimension_numbers<[1], [0], [0], [1], [0, 0, 1, 1], [], []>} : vector<2x128xf32>, vector<128x512xf32>, vector<2x512xf32> -> vector<2x512xf32>
    %13 = arith.addf %11, %12 : vector<2x512xf32>
    %14 = vector.extract_strided_slice %13 {offsets = [0, 0], sizes = [2, 384], strides = [1, 1]} : vector<2x512xf32> to vector<2x384xf32>
    %15 = arith.negf %14 : vector<2x384xf32>
    %16 = math.exp %15 : vector<2x384xf32>
    %cst_13 = arith.constant 1.000000e+00 : f32
    %17 = vector.broadcast %cst_13 : f32 to vector<2x384xf32>
    %18 = arith.addf %17, %16 : vector<2x384xf32>
    %19 = arith.divf %17, %18 : vector<2x384xf32>
    %20 = vector.extract_strided_slice %19 {offsets = [0, 0], sizes = [2, 128], strides = [1, 1]} : vector<2x384xf32> to vector<2x128xf32>
    %21 = vector.extract_strided_slice %19 {offsets = [0, 128], sizes = [2, 128], strides = [1, 1]} : vector<2x384xf32> to vector<2x128xf32>
    %22 = vector.extract_strided_slice %19 {offsets = [0, 256], sizes = [2, 128], strides = [1, 1]} : vector<2x384xf32> to vector<2x128xf32>
    %23 = vector.extract_strided_slice %13 {offsets = [0, 384], sizes = [2, 128], strides = [1, 1]} : vector<2x512xf32> to vector<2x128xf32>
    %24 = math.tanh %23 : vector<2x128xf32>
    %25 = arith.mulf %21, %9 : vector<2x128xf32>
    %26 = arith.mulf %20, %24 : vector<2x128xf32>
    %27 = arith.addf %25, %26 : vector<2x128xf32>
    %28 = math.tanh %27 : vector<2x128xf32>
    %29 = arith.mulf %22, %28 : vector<2x128xf32>
    %30 = vector.extract_strided_slice %1 {offsets = [0, 0], sizes = [1, 128], strides = [1, 1]} : vector<8x128xf32> to vector<1x128xf32>
    %31 = vector.broadcast %30 : vector<1x128xf32> to vector<2x128xf32>
    %32 = arith.mulf %29, %31 : vector<2x128xf32>
    %33 = arith.addf %10, %32 : vector<2x128xf32>
    %34 = vector.extract_strided_slice %7 {offsets = [2, 0], sizes = [2, 512], strides = [1, 1]} : vector<16x512xf32> to vector<2x512xf32>
    %cst_14 = arith.constant dense<0.000000e+00> : vector<2x512xf32>
    %35 = tpu.matmul %29, %0, %cst_14 {dimension_numbers = #tpu.dot_dimension_numbers<[1], [0], [0], [1], [0, 0, 1, 1], [], []>} : vector<2x128xf32>, vector<128x512xf32>, vector<2x512xf32> -> vector<2x512xf32>
    %36 = arith.addf %34, %35 : vector<2x512xf32>
    %37 = vector.extract_strided_slice %36 {offsets = [0, 0], sizes = [2, 384], strides = [1, 1]} : vector<2x512xf32> to vector<2x384xf32>
    %38 = arith.negf %37 : vector<2x384xf32>
    %39 = math.exp %38 : vector<2x384xf32>
    %cst_15 = arith.constant 1.000000e+00 : f32
    %40 = vector.broadcast %cst_15 : f32 to vector<2x384xf32>
    %41 = arith.addf %40, %39 : vector<2x384xf32>
    %42 = arith.divf %40, %41 : vector<2x384xf32>
    %43 = vector.extract_strided_slice %42 {offsets = [0, 0], sizes = [2, 128], strides = [1, 1]} : vector<2x384xf32> to vector<2x128xf32>
    %44 = vector.extract_strided_slice %42 {offsets = [0, 128], sizes = [2, 128], strides = [1, 1]} : vector<2x384xf32> to vector<2x128xf32>
    %45 = vector.extract_strided_slice %42 {offsets = [0, 256], sizes = [2, 128], strides = [1, 1]} : vector<2x384xf32> to vector<2x128xf32>
    %46 = vector.extract_strided_slice %36 {offsets = [0, 384], sizes = [2, 128], strides = [1, 1]} : vector<2x512xf32> to vector<2x128xf32>
    %47 = math.tanh %46 : vector<2x128xf32>
    %48 = arith.mulf %44, %27 : vector<2x128xf32>
    %49 = arith.mulf %43, %47 : vector<2x128xf32>
    %50 = arith.addf %48, %49 : vector<2x128xf32>
    %51 = math.tanh %50 : vector<2x128xf32>
    %52 = arith.mulf %45, %51 : vector<2x128xf32>
    %53 = vector.extract_strided_slice %1 {offsets = [1, 0], sizes = [1, 128], strides = [1, 1]} : vector<8x128xf32> to vector<1x128xf32>
    %54 = vector.broadcast %53 : vector<1x128xf32> to vector<2x128xf32>
    %55 = arith.mulf %52, %54 : vector<2x128xf32>
    %56 = arith.addf %33, %55 : vector<2x128xf32>
    %57 = vector.extract_strided_slice %7 {offsets = [4, 0], sizes = [2, 512], strides = [1, 1]} : vector<16x512xf32> to vector<2x512xf32>
    %cst_16 = arith.constant dense<0.000000e+00> : vector<2x512xf32>
    %58 = tpu.matmul %52, %0, %cst_16 {dimension_numbers = #tpu.dot_dimension_numbers<[1], [0], [0], [1], [0, 0, 1, 1], [], []>} : vector<2x128xf32>, vector<128x512xf32>, vector<2x512xf32> -> vector<2x512xf32>
    %59 = arith.addf %57, %58 : vector<2x512xf32>
    %60 = vector.extract_strided_slice %59 {offsets = [0, 0], sizes = [2, 384], strides = [1, 1]} : vector<2x512xf32> to vector<2x384xf32>
    %61 = arith.negf %60 : vector<2x384xf32>
    %62 = math.exp %61 : vector<2x384xf32>
    %cst_17 = arith.constant 1.000000e+00 : f32
    %63 = vector.broadcast %cst_17 : f32 to vector<2x384xf32>
    %64 = arith.addf %63, %62 : vector<2x384xf32>
    %65 = arith.divf %63, %64 : vector<2x384xf32>
    %66 = vector.extract_strided_slice %65 {offsets = [0, 0], sizes = [2, 128], strides = [1, 1]} : vector<2x384xf32> to vector<2x128xf32>
    %67 = vector.extract_strided_slice %65 {offsets = [0, 128], sizes = [2, 128], strides = [1, 1]} : vector<2x384xf32> to vector<2x128xf32>
    %68 = vector.extract_strided_slice %65 {offsets = [0, 256], sizes = [2, 128], strides = [1, 1]} : vector<2x384xf32> to vector<2x128xf32>
    %69 = vector.extract_strided_slice %59 {offsets = [0, 384], sizes = [2, 128], strides = [1, 1]} : vector<2x512xf32> to vector<2x128xf32>
    %70 = math.tanh %69 : vector<2x128xf32>
    %71 = arith.mulf %67, %50 : vector<2x128xf32>
    %72 = arith.mulf %66, %70 : vector<2x128xf32>
    %73 = arith.addf %71, %72 : vector<2x128xf32>
    %74 = math.tanh %73 : vector<2x128xf32>
    %75 = arith.mulf %68, %74 : vector<2x128xf32>
    %76 = vector.extract_strided_slice %1 {offsets = [2, 0], sizes = [1, 128], strides = [1, 1]} : vector<8x128xf32> to vector<1x128xf32>
    %77 = vector.broadcast %76 : vector<1x128xf32> to vector<2x128xf32>
    %78 = arith.mulf %75, %77 : vector<2x128xf32>
    %79 = arith.addf %56, %78 : vector<2x128xf32>
    %80 = vector.extract_strided_slice %7 {offsets = [6, 0], sizes = [2, 512], strides = [1, 1]} : vector<16x512xf32> to vector<2x512xf32>
    %cst_18 = arith.constant dense<0.000000e+00> : vector<2x512xf32>
    %81 = tpu.matmul %75, %0, %cst_18 {dimension_numbers = #tpu.dot_dimension_numbers<[1], [0], [0], [1], [0, 0, 1, 1], [], []>} : vector<2x128xf32>, vector<128x512xf32>, vector<2x512xf32> -> vector<2x512xf32>
    %82 = arith.addf %80, %81 : vector<2x512xf32>
    %83 = vector.extract_strided_slice %82 {offsets = [0, 0], sizes = [2, 384], strides = [1, 1]} : vector<2x512xf32> to vector<2x384xf32>
    %84 = arith.negf %83 : vector<2x384xf32>
    %85 = math.exp %84 : vector<2x384xf32>
    %cst_19 = arith.constant 1.000000e+00 : f32
    %86 = vector.broadcast %cst_19 : f32 to vector<2x384xf32>
    %87 = arith.addf %86, %85 : vector<2x384xf32>
    %88 = arith.divf %86, %87 : vector<2x384xf32>
    %89 = vector.extract_strided_slice %88 {offsets = [0, 0], sizes = [2, 128], strides = [1, 1]} : vector<2x384xf32> to vector<2x128xf32>
    %90 = vector.extract_strided_slice %88 {offsets = [0, 128], sizes = [2, 128], strides = [1, 1]} : vector<2x384xf32> to vector<2x128xf32>
    %91 = vector.extract_strided_slice %88 {offsets = [0, 256], sizes = [2, 128], strides = [1, 1]} : vector<2x384xf32> to vector<2x128xf32>
    %92 = vector.extract_strided_slice %82 {offsets = [0, 384], sizes = [2, 128], strides = [1, 1]} : vector<2x512xf32> to vector<2x128xf32>
    %93 = math.tanh %92 : vector<2x128xf32>
    %94 = arith.mulf %90, %73 : vector<2x128xf32>
    %95 = arith.mulf %89, %93 : vector<2x128xf32>
    %96 = arith.addf %94, %95 : vector<2x128xf32>
    %97 = math.tanh %96 : vector<2x128xf32>
    %98 = arith.mulf %91, %97 : vector<2x128xf32>
    %99 = vector.extract_strided_slice %1 {offsets = [3, 0], sizes = [1, 128], strides = [1, 1]} : vector<8x128xf32> to vector<1x128xf32>
    %100 = vector.broadcast %99 : vector<1x128xf32> to vector<2x128xf32>
    %101 = arith.mulf %98, %100 : vector<2x128xf32>
    %102 = arith.addf %79, %101 : vector<2x128xf32>
    %103 = vector.extract_strided_slice %7 {offsets = [8, 0], sizes = [2, 512], strides = [1, 1]} : vector<16x512xf32> to vector<2x512xf32>
    %cst_20 = arith.constant dense<0.000000e+00> : vector<2x512xf32>
    %104 = tpu.matmul %98, %0, %cst_20 {dimension_numbers = #tpu.dot_dimension_numbers<[1], [0], [0], [1], [0, 0, 1, 1], [], []>} : vector<2x128xf32>, vector<128x512xf32>, vector<2x512xf32> -> vector<2x512xf32>
    %105 = arith.addf %103, %104 : vector<2x512xf32>
    %106 = vector.extract_strided_slice %105 {offsets = [0, 0], sizes = [2, 384], strides = [1, 1]} : vector<2x512xf32> to vector<2x384xf32>
    %107 = arith.negf %106 : vector<2x384xf32>
    %108 = math.exp %107 : vector<2x384xf32>
    %cst_21 = arith.constant 1.000000e+00 : f32
    %109 = vector.broadcast %cst_21 : f32 to vector<2x384xf32>
    %110 = arith.addf %109, %108 : vector<2x384xf32>
    %111 = arith.divf %109, %110 : vector<2x384xf32>
    %112 = vector.extract_strided_slice %111 {offsets = [0, 0], sizes = [2, 128], strides = [1, 1]} : vector<2x384xf32> to vector<2x128xf32>
    %113 = vector.extract_strided_slice %111 {offsets = [0, 128], sizes = [2, 128], strides = [1, 1]} : vector<2x384xf32> to vector<2x128xf32>
    %114 = vector.extract_strided_slice %111 {offsets = [0, 256], sizes = [2, 128], strides = [1, 1]} : vector<2x384xf32> to vector<2x128xf32>
    %115 = vector.extract_strided_slice %105 {offsets = [0, 384], sizes = [2, 128], strides = [1, 1]} : vector<2x512xf32> to vector<2x128xf32>
    %116 = math.tanh %115 : vector<2x128xf32>
    %117 = arith.mulf %113, %96 : vector<2x128xf32>
    %118 = arith.mulf %112, %116 : vector<2x128xf32>
    %119 = arith.addf %117, %118 : vector<2x128xf32>
    %120 = math.tanh %119 : vector<2x128xf32>
    %121 = arith.mulf %114, %120 : vector<2x128xf32>
    %122 = vector.extract_strided_slice %1 {offsets = [4, 0], sizes = [1, 128], strides = [1, 1]} : vector<8x128xf32> to vector<1x128xf32>
    %123 = vector.broadcast %122 : vector<1x128xf32> to vector<2x128xf32>
    %124 = arith.mulf %121, %123 : vector<2x128xf32>
    %125 = arith.addf %102, %124 : vector<2x128xf32>
    %126 = vector.extract_strided_slice %7 {offsets = [10, 0], sizes = [2, 512], strides = [1, 1]} : vector<16x512xf32> to vector<2x512xf32>
    %cst_22 = arith.constant dense<0.000000e+00> : vector<2x512xf32>
    %127 = tpu.matmul %121, %0, %cst_22 {dimension_numbers = #tpu.dot_dimension_numbers<[1], [0], [0], [1], [0, 0, 1, 1], [], []>} : vector<2x128xf32>, vector<128x512xf32>, vector<2x512xf32> -> vector<2x512xf32>
    %128 = arith.addf %126, %127 : vector<2x512xf32>
    %129 = vector.extract_strided_slice %128 {offsets = [0, 0], sizes = [2, 384], strides = [1, 1]} : vector<2x512xf32> to vector<2x384xf32>
    %130 = arith.negf %129 : vector<2x384xf32>
    %131 = math.exp %130 : vector<2x384xf32>
    %cst_23 = arith.constant 1.000000e+00 : f32
    %132 = vector.broadcast %cst_23 : f32 to vector<2x384xf32>
    %133 = arith.addf %132, %131 : vector<2x384xf32>
    %134 = arith.divf %132, %133 : vector<2x384xf32>
    %135 = vector.extract_strided_slice %134 {offsets = [0, 0], sizes = [2, 128], strides = [1, 1]} : vector<2x384xf32> to vector<2x128xf32>
    %136 = vector.extract_strided_slice %134 {offsets = [0, 128], sizes = [2, 128], strides = [1, 1]} : vector<2x384xf32> to vector<2x128xf32>
    %137 = vector.extract_strided_slice %134 {offsets = [0, 256], sizes = [2, 128], strides = [1, 1]} : vector<2x384xf32> to vector<2x128xf32>
    %138 = vector.extract_strided_slice %128 {offsets = [0, 384], sizes = [2, 128], strides = [1, 1]} : vector<2x512xf32> to vector<2x128xf32>
    %139 = math.tanh %138 : vector<2x128xf32>
    %140 = arith.mulf %136, %119 : vector<2x128xf32>
    %141 = arith.mulf %135, %139 : vector<2x128xf32>
    %142 = arith.addf %140, %141 : vector<2x128xf32>
    %143 = math.tanh %142 : vector<2x128xf32>
    %144 = arith.mulf %137, %143 : vector<2x128xf32>
    %145 = vector.extract_strided_slice %1 {offsets = [5, 0], sizes = [1, 128], strides = [1, 1]} : vector<8x128xf32> to vector<1x128xf32>
    %146 = vector.broadcast %145 : vector<1x128xf32> to vector<2x128xf32>
    %147 = arith.mulf %144, %146 : vector<2x128xf32>
    %148 = arith.addf %125, %147 : vector<2x128xf32>
    %149 = vector.extract_strided_slice %7 {offsets = [12, 0], sizes = [2, 512], strides = [1, 1]} : vector<16x512xf32> to vector<2x512xf32>
    %cst_24 = arith.constant dense<0.000000e+00> : vector<2x512xf32>
    %150 = tpu.matmul %144, %0, %cst_24 {dimension_numbers = #tpu.dot_dimension_numbers<[1], [0], [0], [1], [0, 0, 1, 1], [], []>} : vector<2x128xf32>, vector<128x512xf32>, vector<2x512xf32> -> vector<2x512xf32>
    %151 = arith.addf %149, %150 : vector<2x512xf32>
    %152 = vector.extract_strided_slice %151 {offsets = [0, 0], sizes = [2, 384], strides = [1, 1]} : vector<2x512xf32> to vector<2x384xf32>
    %153 = arith.negf %152 : vector<2x384xf32>
    %154 = math.exp %153 : vector<2x384xf32>
    %cst_25 = arith.constant 1.000000e+00 : f32
    %155 = vector.broadcast %cst_25 : f32 to vector<2x384xf32>
    %156 = arith.addf %155, %154 : vector<2x384xf32>
    %157 = arith.divf %155, %156 : vector<2x384xf32>
    %158 = vector.extract_strided_slice %157 {offsets = [0, 0], sizes = [2, 128], strides = [1, 1]} : vector<2x384xf32> to vector<2x128xf32>
    %159 = vector.extract_strided_slice %157 {offsets = [0, 128], sizes = [2, 128], strides = [1, 1]} : vector<2x384xf32> to vector<2x128xf32>
    %160 = vector.extract_strided_slice %157 {offsets = [0, 256], sizes = [2, 128], strides = [1, 1]} : vector<2x384xf32> to vector<2x128xf32>
    %161 = vector.extract_strided_slice %151 {offsets = [0, 384], sizes = [2, 128], strides = [1, 1]} : vector<2x512xf32> to vector<2x128xf32>
    %162 = math.tanh %161 : vector<2x128xf32>
    %163 = arith.mulf %159, %142 : vector<2x128xf32>
    %164 = arith.mulf %158, %162 : vector<2x128xf32>
    %165 = arith.addf %163, %164 : vector<2x128xf32>
    %166 = math.tanh %165 : vector<2x128xf32>
    %167 = arith.mulf %160, %166 : vector<2x128xf32>
    %168 = vector.extract_strided_slice %1 {offsets = [6, 0], sizes = [1, 128], strides = [1, 1]} : vector<8x128xf32> to vector<1x128xf32>
    %169 = vector.broadcast %168 : vector<1x128xf32> to vector<2x128xf32>
    %170 = arith.mulf %167, %169 : vector<2x128xf32>
    %171 = arith.addf %148, %170 : vector<2x128xf32>
    %172 = vector.extract_strided_slice %7 {offsets = [14, 0], sizes = [2, 512], strides = [1, 1]} : vector<16x512xf32> to vector<2x512xf32>
    %cst_26 = arith.constant dense<0.000000e+00> : vector<2x512xf32>
    %173 = tpu.matmul %167, %0, %cst_26 {dimension_numbers = #tpu.dot_dimension_numbers<[1], [0], [0], [1], [0, 0, 1, 1], [], []>} : vector<2x128xf32>, vector<128x512xf32>, vector<2x512xf32> -> vector<2x512xf32>
    %174 = arith.addf %172, %173 : vector<2x512xf32>
    %175 = vector.extract_strided_slice %174 {offsets = [0, 0], sizes = [2, 384], strides = [1, 1]} : vector<2x512xf32> to vector<2x384xf32>
    %176 = arith.negf %175 : vector<2x384xf32>
    %177 = math.exp %176 : vector<2x384xf32>
    %cst_27 = arith.constant 1.000000e+00 : f32
    %178 = vector.broadcast %cst_27 : f32 to vector<2x384xf32>
    %179 = arith.addf %178, %177 : vector<2x384xf32>
    %180 = arith.divf %178, %179 : vector<2x384xf32>
    %181 = vector.extract_strided_slice %180 {offsets = [0, 0], sizes = [2, 128], strides = [1, 1]} : vector<2x384xf32> to vector<2x128xf32>
    %182 = vector.extract_strided_slice %180 {offsets = [0, 128], sizes = [2, 128], strides = [1, 1]} : vector<2x384xf32> to vector<2x128xf32>
    %183 = vector.extract_strided_slice %180 {offsets = [0, 256], sizes = [2, 128], strides = [1, 1]} : vector<2x384xf32> to vector<2x128xf32>
    %184 = vector.extract_strided_slice %174 {offsets = [0, 384], sizes = [2, 128], strides = [1, 1]} : vector<2x512xf32> to vector<2x128xf32>
    %185 = math.tanh %184 : vector<2x128xf32>
    %186 = arith.mulf %182, %165 : vector<2x128xf32>
    %187 = arith.mulf %181, %185 : vector<2x128xf32>
    %188 = arith.addf %186, %187 : vector<2x128xf32>
    %189 = math.tanh %188 : vector<2x128xf32>
    %190 = arith.mulf %183, %189 : vector<2x128xf32>
    %191 = vector.extract_strided_slice %1 {offsets = [7, 0], sizes = [1, 128], strides = [1, 1]} : vector<8x128xf32> to vector<1x128xf32>
    %192 = vector.broadcast %191 : vector<1x128xf32> to vector<2x128xf32>
    %193 = arith.mulf %190, %192 : vector<2x128xf32>
    %194 = arith.addf %171, %193 : vector<2x128xf32>
    %cst_28 = arith.constant dense<0.000000e+00> : vector<2xf32>
    %195 = vector.multi_reduction <add>, %194, %cst_28 [1] : vector<2x128xf32> to vector<2xf32>
    %196 = vector.shape_cast %195 : vector<2xf32> to vector<2x1xf32>
    %c0_29 = arith.constant 0 : index
    %c0_30 = arith.constant 0 : index
    %197 = vector.load %arg5[%c0_29, %c0_30] : memref<1x1xf32, #tpu.memory_space<vmem>>, vector<1x1xf32>
    %198 = vector.broadcast %197 : vector<1x1xf32> to vector<2x1xf32>
    %199 = arith.addf %196, %198 : vector<2x1xf32>
    %c0_31 = arith.constant 0 : index
    %c0_32 = arith.constant 0 : index
    %200 = vector.load %arg6[%c0_31, %c0_32] : memref<2x1xf32, #tpu.memory_space<vmem>>, vector<2x1xf32>
    tpu.vector_store %arg6[%c0_31, %c0_32], %199 {strides = array<i32>} : memref<2x1xf32, #tpu.memory_space<vmem>>, vector<2x1xf32>,
    return
  }
}

</mosaic_0001>

<bundles_post_ra>
// kernel: tpu_custom_call.1
= control target key start
LH: loop header
LB: loop body
LE: loop exit
PB: predicated region body
PF: predicated region fallthrough
CT: control target
= control target key end

     0   :  { %s3113_s0 = inlined_call_operand.vmem [shape: f32[16,4], index: 0, kind: input, shape index: {}]   ;;  %s3114_s1 = inlined_call_operand.vmem [shape: f32[4,512], index: 1, kind: input, shape index: {}]   ;;  %s3115_s2 = inlined_call_operand.hbm [shape: f32[128,512], index: 2, kind: input, shape index: {}]   ;;  %s3116_s3 = inlined_call_operand.vmem [shape: f32[1,512], index: 3, kind: input, shape index: {}]   ;;  %s3117_s4 = inlined_call_operand.vmem [shape: f32[8,128], index: 4, kind: input, shape index: {}]   ;;  %s3118_s5 = inlined_call_operand.<no memory space> [shape: f32[1,1], index: 5, kind: input, shape index: {}]   ;;  %s3119_s6 = inlined_call_operand.vmem [shape: f32[2,1], index: 6, kind: output, shape index: {}]  }
   0x1   :  { %v11_v0 = vstv %s3118_s5 }
   0x2   :  { %12 = vst [vmem:[#allocation2] sm:$0x1] %v11_v0 }
   0x3   :  { %13 = vsyncpa [#allocation4], 0  ;;  %s2560_s23 = smov [#allocation3]   ;;  %s2536_s27 = scalar_lea.hbm %s3115_s2, 8192 }
   0x4   :  { %s23_s24 = sshll.u32 %s2560_s23, 4  ;;  %p2537_p0 = scmp.ne.s32.totalorder %s3115_s2, %s2536_s27  ;;  %s24_s24 = int_to_ptr.vmem [resolvable:$true] %s23_s24 }
   0x5   :  { %p2540_p1 = scmp.lt.u32.totalorder %s2536_s27, %s3115_s2 }
   0x7   :  { %p2542_p2 = pnand %p2540_p1, %p2537_p0 }
   0x9   :  { %2545 = shalt.err (!%p2542_p2)
}
   0xa   :  { %s2546_s5 = scalar_lea.vmem %s24_s24, 8192  ;;  %p2551_p4 = scmp.lt.s32.totalorder %s24_s24, %s24_s24 }
   0xb   :  { %p2547_p3 = scmp.ne.s32.totalorder %s24_s24, %s2546_s5  ;;  %p2552_p5 = scmp.lt.s32.totalorder %s2546_s5, %s2546_s5 }
   0xd   :  { %p2553_p6 = por %p2552_p5, %p2551_p4 }
   0xf   :  { %p2554_p7 = pnand %p2553_p6, %p2547_p3 }
  0x11   :  { %2557 = shalt.err (!%p2554_p7)
}
  0x12   :  { %s2561_s8 = smov 512   ;;  %s2562_s9 = smov 32  }
  0x13   :  { %29 = dma.hbm_to_vmem [thread:$0]  %s3115_s2, 8192, %s24_s24, [#allocation4], %s2561_s8, %s2561_s8, %s2562_s9  }
  0x14   :  { %2558 = dma.done.wait [#allocation4], 8192  }
  0x15   :  { %2559 = vsyncadd [#allocation4], 4294959104  ;;  %v2563_v1 = vmov 0.0   ;;  %v106_v2 = vld [vmem:[%s3114_s1] sm:$0xff]  ;;  %vm141_vm0 = vcmask 1043456   ;;  %v107_v3 = vld [vmem:[%s3114_s1 + $0x8] sm:$0xff] }
  0x16   :  { %214 = vmatprep.mubr.f32.mxu0 %v2563_v1  ;;  %291 = vmatprep.mubr.f32.mxu1 %v2563_v1  ;;  %v104_v4 = vld [vmem:[%s3113_s0] sm:$0xff]  ;;  %v132_v5 = vcombine.high %v106_v2, %v106_v2  ;;  %v133_v6 = vcombine.high %v107_v3, %v107_v3  ;;  %v40_v7 = vld [vmem:[#allocation3 + $0x8] sm:$0xff]  ;;  %vm134_vm1 = vcmask 31744   ;;  %v41_v16 = vld [vmem:[#allocation3 + $0x10] sm:$0xff]  ;;  %vm1838_vm2 = vcmask 1041408  }
  0x17   :  { %v44_v8 = vld [vmem:[#allocation3 + $0x28] sm:$0xff]  ;;  %v42_v9 = vld [vmem:[#allocation3 + $0x18] sm:$0xff]  ;;  %v39_v12 = vld [vmem:[#allocation3] sm:$0xff]  ;;  %vm1850_vm3 = vcmask 1024  }
  0x18   :  { %v2625_v10 = vpack.c.bf16 %v44_v8, %v40_v7  ;;  %v46_v11 = vld [vmem:[#allocation3 + $0x38] sm:$0xff]  ;;  %v43_v13 = vld [vmem:[#allocation3 + $0x20] sm:$0xff]  ;;  %1857 = vmatprep.subr.msk.mxu0 %vm141_vm0, %v132_v5  ;;  %1861 = vmatprep.subr.msk.mxu1 %vm141_vm0, %v133_v6  ;;  %v45_v17 = vld [vmem:[#allocation3 + $0x30] sm:$0xff] }
  0x19   :  { %v2629_v14 = vpack.c.bf16 %v46_v11, %v42_v9  ;;  %v2631_v15 = vpack.c.bf16 %v43_v13, %v39_v12  ;;  %v48_v18 = vld [vmem:[#allocation3 + $0x48] sm:$0xff]  ;;  %1858 = vmatpush1.msk.msra.mxu0 %vm141_vm0, %v106_v2  ;;  %1862 = vmatpush1.msk.msra.mxu1 %vm141_vm0, %v107_v3  ;;  %v2635_v19 = vpack.c.bf16 %v45_v17, %v41_v16  ;;  %v50_v21 = vld [vmem:[#allocation3 + $0x58] sm:$0xff]  ;;  %v47_v25 = vld [vmem:[#allocation3 + $0x40] sm:$0xff] }
  0x1a   :  { %v52_v20 = vld [vmem:[#allocation3 + $0x68] sm:$0xff]  ;;  %v54_v22 = vld [vmem:[#allocation3 + $0x78] sm:$0xff]  ;;  %1859 = vmatmul.mubr.msk.f32.vlgmr.msra.gmra.mrb[0].mxu0 %vm134_vm1, %v104_v4  ;;  %1891 = vmatprep.subr.bf16.mxu0 %v2625_v10  ;;  %v51_v26 = vld [vmem:[#allocation3 + $0x60] sm:$0xff] }
  0x1b   :  { %v2639_v23 = vpack.c.bf16 %v52_v20, %v48_v18  ;;  %v2641_v24 = vpack.c.bf16 %v54_v22, %v50_v21  ;;  %v49_v27 = vld [vmem:[#allocation3 + $0x50] sm:$0xff]  ;;  %1923 = vmatprep.subr.bf16.mxu1 %v2629_v14  ;;  %1863 = vmatmul.mubr.msk.f32.vlgmr.msra.gmra.mrb[0].mxu1 %vm134_vm1, %v104_v4  ;;  %v56_v29 = vld [vmem:[#allocation3 + $0x88] sm:$0xff]  ;;  %v2647_v31 = vpack.c.bf16 %v51_v26, %v47_v25  ;;  %v58_v33 = vld [vmem:[#allocation3 + $0x98] sm:$0xff] }
  0x1c   :  { %v53_v28 = vld [vmem:[#allocation3 + $0x70] sm:$0xff]  ;;  %v60_v30 = vld [vmem:[#allocation3 + $0xa8] sm:$0xff]  ;;  %1893 = vmatpush1.bf16.msra.mxu0 %v2631_v15  ;;  %1925 = vmatpush1.bf16.msra.mxu1 %v2635_v19  ;;  %v62_v34 = vld [vmem:[#allocation3 + $0xb8] sm:$0xff] }
  0x1d   :  { %v2649_v32 = vpack.c.bf16 %v53_v28, %v49_v27  ;;  %v55_v35 = vld [vmem:[#allocation3 + $0x80] sm:$0xff]  ;;  %1895 = vmatprep.subr.bf16.mxu0 %v2639_v23  ;;  %1927 = vmatprep.subr.bf16.mxu1 %v2641_v24  ;;  %v2653_v36 = vpack.c.bf16 %v60_v30, %v56_v29  ;;  %v2655_v37 = vpack.c.bf16 %v62_v34, %v58_v33  ;;  %v57_v39 = vld [vmem:[#allocation3 + $0x90] sm:$0xff]  ;;  %v64_v41 = vld [vmem:[#allocation3 + $0xc8] sm:$0xff] }
  0x1e   :  { %v59_v38 = vld [vmem:[#allocation3 + $0xa0] sm:$0xff]  ;;  %v61_v40 = vld [vmem:[#allocation3 + $0xb0] sm:$0xff]  ;;  %v68_v42 = vld [vmem:[#allocation3 + $0xe8] sm:$0xff]  ;;  %220 = vmatprep.mubr.f32.mxu0 %v2563_v1  ;;  %297 = vmatprep.mubr.f32.mxu1 %v2563_v1 }
  0x1f   :  { %v66_v43 = vld [vmem:[#allocation3 + $0xd8] sm:$0xff]  ;;  %v2661_v45 = vpack.c.bf16 %v59_v38, %v55_v35  ;;  %v2663_v46 = vpack.c.bf16 %v61_v40, %v57_v39  ;;  %v63_v47 = vld [vmem:[#allocation3 + $0xc0] sm:$0xff]  ;;  %v2667_v49 = vpack.c.bf16 %v68_v42, %v64_v41  ;;  %v65_v51 = vld [vmem:[#allocation3 + $0xd0] sm:$0xff] }
  0x20   :  { %v70_v44 = vld [vmem:[#allocation3 + $0xf8] sm:$0xff]  ;;  %1897 = vmatpush1.bf16.msra.mxu0 %v2647_v31  ;;  %1929 = vmatpush1.bf16.msra.mxu1 %v2649_v32  ;;  %v67_v48 = vld [vmem:[#allocation3 + $0xe0] sm:$0xff]  ;;  %v69_v52 = vld [vmem:[#allocation3 + $0xf0] sm:$0xff] }
  0x21   :  { %1899 = vmatprep.subr.bf16.mxu0 %v2653_v36  ;;  %1931 = vmatprep.subr.bf16.mxu1 %v2655_v37  ;;  %v2669_v50 = vpack.c.bf16 %v70_v44, %v66_v43  ;;  %v72_v53 = vld [vmem:[#allocation3 + $0x108] sm:$0xff]  ;;  %v74_v55 = vld [vmem:[#allocation3 + $0x118] sm:$0xff]  ;;  %v2673_v57 = vpack.c.bf16 %v67_v48, %v63_v47  ;;  %v2675_v58 = vpack.c.bf16 %v69_v52, %v65_v51  ;;  %v71_v59 = vld [vmem:[#allocation3 + $0x100] sm:$0xff] }
  0x22   :  { %v76_v54 = vld [vmem:[#allocation3 + $0x128] sm:$0xff]  ;;  %v78_v56 = vld [vmem:[#allocation3 + $0x138] sm:$0xff]  ;;  %v75_v60 = vld [vmem:[#allocation3 + $0x120] sm:$0xff] }
  0x23   :  { %v2679_v61 = vpack.c.bf16 %v76_v54, %v72_v53  ;;  %v2681_v62 = vpack.c.bf16 %v78_v56, %v74_v55  ;;  %v73_v63 = vld [vmem:[#allocation3 + $0x110] sm:$0xff]  ;;  %v80_v2 = vld [vmem:[#allocation3 + $0x148] sm:$0xff]  ;;  %v82_v4 = vld [vmem:[#allocation3 + $0x158] sm:$0xff]  ;;  %v2685_v6 = vpack.c.bf16 %v75_v60, %v71_v59 }
  0x24   :  { %1901 = vmatpush1.bf16.msra.mxu0 %v2661_v45  ;;  %1933 = vmatpush1.bf16.msra.mxu1 %v2663_v46  ;;  %v77_v0 = vld [vmem:[#allocation3 + $0x130] sm:$0xff]  ;;  %v84_v3 = vld [vmem:[#allocation3 + $0x168] sm:$0xff]  ;;  %v86_v5 = vld [vmem:[#allocation3 + $0x178] sm:$0xff] }
  0x25   :  { %1903 = vmatprep.subr.bf16.mxu0 %v2667_v49  ;;  %1935 = vmatprep.subr.bf16.mxu1 %v2669_v50  ;;  %v2687_v7 = vpack.c.bf16 %v77_v0, %v73_v63  ;;  %v79_v8 = vld [vmem:[#allocation3 + $0x140] sm:$0xff]  ;;  %v2694_v12 = vpack.c.bf16 %v84_v3, %v80_v2  ;;  %v2696_v13 = vpack.c.bf16 %v86_v5, %v82_v4  ;;  %v81_v16 = vld [vmem:[#allocation3 + $0x150] sm:$0xff]  ;;  %v88_v18 = vld [vmem:[#allocation3 + $0x188] sm:$0xff]  ;;  %v110_v63 = vlaneseq }
  0x26   :  { %v83_v9 = vld [vmem:[#allocation3 + $0x160] sm:$0xff]  ;;  %v85_v17 = vld [vmem:[#allocation3 + $0x170] sm:$0xff]  ;;  %v92_v20 = vld [vmem:[#allocation3 + $0x1a8] sm:$0xff] }
  0x27   :  { %v105_v11 = vld [vmem:[%s3113_s0 + $0x8] sm:$0xff]  ;;  %v90_v21 = vld [vmem:[#allocation3 + $0x198] sm:$0xff]  ;;  %v2704_v25 = vpack.c.bf16 %v83_v9, %v79_v8  ;;  %v2706_v26 = vpack.c.bf16 %v85_v17, %v81_v16  ;;  %v2710_v29 = vpack.c.bf16 %v92_v20, %v88_v18  ;;  %v89_v33 = vld [vmem:[#allocation3 + $0x190] sm:$0xff]  ;;  %v2774_v0 = vshrl.u32 %v110_v63, 7 }
  0x28   :  { %1905 = vmatpush1.bf16.msra.mxu0 %v2673_v57  ;;  %1937 = vmatpush1.bf16.msra.mxu1 %v2675_v58  ;;  %v94_v22 = vld [vmem:[#allocation3 + $0x1b8] sm:$0xff]  ;;  %v87_v27 = vld [vmem:[#allocation3 + $0x180] sm:$0xff]  ;;  %v93_v34 = vld [vmem:[#allocation3 + $0x1b0] sm:$0xff] }
  0x29   :  { %1907 = vmatprep.subr.bf16.mxu0 %v2679_v61  ;;  %1939 = vmatprep.subr.bf16.mxu1 %v2681_v62  ;;  %v91_v28 = vld [vmem:[#allocation3 + $0x1a0] sm:$0xff]  ;;  %v2712_v30 = vpack.c.bf16 %v94_v22, %v90_v21  ;;  %v96_v35 = vld [vmem:[#allocation3 + $0x1c8] sm:$0xff]  ;;  %v98_v39 = vld [vmem:[#allocation3 + $0x1d8] sm:$0xff]  ;;  %v2718_v42 = vpack.c.bf16 %v93_v34, %v89_v33  ;;  %v112_v2 = vsub.s32 0, %v2774_v0  ;;  %v120_v3 = vsub.s32 2, %v2774_v0 }
  0x2a   :  { %1860 = vmatmul.mubr.msk.f32.gmra.mrb[2].mxu0 %vm134_vm1, %v105_v11  ;;  %1864 = vmatmul.mubr.msk.f32.gmra.mrb[2].mxu1 %vm134_vm1, %v105_v11  ;;  %v100_v38 = vld [vmem:[#allocation3 + $0x1e8] sm:$0xff]  ;;  %v102_v40 = vld [vmem:[#allocation3 + $0x1f8] sm:$0xff]  ;;  %v2716_v41 = vpack.c.bf16 %v91_v28, %v87_v27  ;;  %v95_v43 = vld [vmem:[#allocation3 + $0x1c0] sm:$0xff]  ;;  %v116_v5 = vsub.s32 1, %v2774_v0  ;;  %v3120_v8 = vsub.s32 3, %v2774_v0 }
  0x2b   :  { %368 = vmatprep.mubr.f32.mxu0 %v2563_v1  ;;  %439 = vmatprep.mubr.f32.mxu1 %v2563_v1  ;;  %v2722_v44 = vpack.c.bf16 %v100_v38, %v96_v35  ;;  %v2724_v47 = vpack.c.bf16 %v102_v40, %v98_v39  ;;  %v99_v48 = vld [vmem:[#allocation3 + $0x1e0] sm:$0xff]  ;;  %v97_v51 = vld [vmem:[#allocation3 + $0x1d0] sm:$0xff] }
  0x2c   :  { %1909 = vmatpush1.bf16.msra.mxu0 %v2685_v6  ;;  %1941 = vmatpush1.bf16.msra.mxu1 %v2687_v7  ;;  %v101_v52 = vld [vmem:[#allocation3 + $0x1f0] sm:$0xff]  ;;  %v2728_v53 = vpack.c.bf16 %v99_v48, %v95_v43  ;;  %v108_v4 = vld [vmem:[%s3116_s3] sm:$0xf] }
  0x2d   :  { %1911 = vmatprep.subr.bf16.mxu0 %v2694_v12  ;;  %1943 = vmatprep.subr.bf16.mxu1 %v2696_v13  ;;  %v2730_v54 = vpack.c.bf16 %v101_v52, %v97_v51  ;;  %v113_v9 = vrot.slane %v108_v4, %v112_v2  ;;  %v121_v11 = vrot.slane %v108_v4, %v120_v3 }
  0x2e   :  { %v117_v16 = vrot.slane %v108_v4, %v116_v5  ;;  %v125_v17 = vrot.slane %v108_v4, %v3120_v8 }
  0x30   :  { %1913 = vmatpush1.bf16.msra.mxu0 %v2704_v25  ;;  %1945 = vmatpush1.bf16.msra.mxu1 %v2706_v26 }
  0x31   :  { %1915 = vmatprep.subr.bf16.mxu0 %v2710_v29  ;;  %1947 = vmatprep.subr.bf16.mxu1 %v2712_v30 }
  0x34   :  { %1917 = vmatpush1.bf16.msra.mxu0 %v2716_v41  ;;  %1949 = vmatpush1.bf16.msra.mxu1 %v2718_v42 }
  0x35   :  { %1919 = vmatprep.subr.bf16.mxu0 %v2722_v44  ;;  %1951 = vmatprep.subr.bf16.mxu1 %v2724_v47 }
  0x38   :  { %1921 = vmatpush1.bf16.msra.mxu0 %v2728_v53  ;;  %1953 = vmatpush1.bf16.msra.mxu1 %v2730_v54 }
  0x39   :  { %1955 = vmatprep.subr.bf16.mxu0 %v2625_v10  ;;  %1987 = vmatprep.subr.bf16.mxu1 %v2629_v14 }
  0x3b   :  { %369 = vmatmul.mubr.f32.vlgmr.msra.gmra.mrb[4].mxu0 %v2563_v1  ;;  %440 = vmatmul.mubr.f32.vlgmr.msra.gmra.mrb[4].mxu1 %v2563_v1 }
  0x3c   :  { %1957 = vmatpush1.bf16.msra.mxu0 %v2631_v15  ;;  %1989 = vmatpush1.bf16.msra.mxu1 %v2635_v19 }
  0x3d   :  { %1959 = vmatprep.subr.bf16.mxu0 %v2639_v23  ;;  %1991 = vmatprep.subr.bf16.mxu1 %v2641_v24 }
  0x3e   :  { %544 = vmatprep.mubr.f32.mxu0 %v2563_v1  ;;  %615 = vmatprep.mubr.f32.mxu1 %v2563_v1 }
  0x40   :  { %1961 = vmatpush1.bf16.msra.mxu0 %v2647_v31  ;;  %1993 = vmatpush1.bf16.msra.mxu1 %v2649_v32 }
  0x41   :  { %1963 = vmatprep.subr.bf16.mxu0 %v2653_v36  ;;  %1995 = vmatprep.subr.bf16.mxu1 %v2655_v37 }
  0x44   :  { %1965 = vmatpush1.bf16.msra.mxu0 %v2661_v45  ;;  %1997 = vmatpush1.bf16.msra.mxu1 %v2663_v46 }
  0x45   :  { %1967 = vmatprep.subr.bf16.mxu0 %v2667_v49  ;;  %1999 = vmatprep.subr.bf16.mxu1 %v2669_v50 }
  0x48   :  { %1969 = vmatpush1.bf16.msra.mxu0 %v2673_v57  ;;  %2001 = vmatpush1.bf16.msra.mxu1 %v2675_v58 }
  0x49   :  { %1971 = vmatprep.subr.bf16.mxu0 %v2679_v61  ;;  %2003 = vmatprep.subr.bf16.mxu1 %v2681_v62 }
  0x4c   :  { %1973 = vmatpush1.bf16.msra.mxu0 %v2685_v6  ;;  %2005 = vmatpush1.bf16.msra.mxu1 %v2687_v7 }
  0x4d   :  { %1975 = vmatprep.subr.bf16.mxu0 %v2694_v12  ;;  %2007 = vmatprep.subr.bf16.mxu1 %v2696_v13 }
  0x50   :  { %1977 = vmatpush1.bf16.msra.mxu0 %v2704_v25  ;;  %2009 = vmatpush1.bf16.msra.mxu1 %v2706_v26 }
  0x51   :  { %1979 = vmatprep.subr.bf16.mxu0 %v2710_v29  ;;  %2011 = vmatprep.subr.bf16.mxu1 %v2712_v30 }
  0x54   :  { %1981 = vmatpush1.bf16.msra.mxu0 %v2716_v41  ;;  %2013 = vmatpush1.bf16.msra.mxu1 %v2718_v42 }
  0x55   :  { %1983 = vmatprep.subr.bf16.mxu0 %v2722_v44  ;;  %2015 = vmatprep.subr.bf16.mxu1 %v2724_v47 }
  0x58   :  { %1985 = vmatpush1.bf16.msra.mxu0 %v2728_v53  ;;  %2017 = vmatpush1.bf16.msra.mxu1 %v2730_v54 }
  0x59   :  { %2019 = vmatprep.subr.bf16.mxu0 %v2625_v10  ;;  %2051 = vmatprep.subr.bf16.mxu1 %v2629_v14 }
  0xed   :  { %v216_v55 = vpop.f32.mrb[0].mxu0 }
  0xee   :  { %v218_v56 = vpop.f32.mrb[1].mxu0  ;;  %v293_v59 = vpop.f32.mrb[0].mxu1  ;;  %v2799_v35 = vadd.f32 %v216_v55, %v113_v9 }
  0xef   :  { %v295_v60 = vpop.f32.mrb[1].mxu1  ;;  %v2801_v38 = vadd.f32 %v218_v56, %v117_v16 }
  0xf0   :  { %v2808_v55 = vadd.f32 %v295_v60, %v125_v17 }
  0xfd   :  { %v222_v18 = vpop.f32.mrb[2].mxu0  ;;  %v299_v20 = vpop.f32.mrb[2].mxu1 }
  0xfe   :  { %v2791_v21 = vadd.f32 %v222_v18, %v113_v9  ;;  %v224_v22 = vpop.f32.mrb[3].mxu0  ;;  %v2793_v27 = vadd.f32 %v299_v20, %v121_v11  ;;  %v301_v28 = vpop.f32.mrb[3].mxu1  ;;  %v2805_v18 = vadd.f32 %v293_v59, %v121_v11 }
  0xff   :  { %v2795_v33 = vadd.f32 %v224_v22, %v117_v16  ;;  %v2797_v34 = vadd.f32 %v301_v28, %v125_v17 }
 0x10e   :  { %v370_v39 = vpop.f32.mrb[4].mxu0  ;;  %v441_v40 = vpop.f32.mrb[4].mxu1 }
 0x10f   :  { %v446_v43 = vadd.f32 %v370_v39, %v2799_v35  ;;  %v372_v48 = vpop.f32.mrb[5].mxu0  ;;  %v443_v51 = vpop.f32.mrb[5].mxu1  ;;  %v448_v20 = vadd.f32 %v441_v40, %v2805_v18 }
 0x110   :  { %v447_v52 = vadd.f32 %v372_v48, %v2801_v38  ;;  %v449_v56 = vadd.f32 %v443_v51, %v2808_v55 }
 0x111   :  { %v1865_v63 = vmul.f32 -1.442695, %v446_v43  ;;  %v1867_v9 = vmul.f32 -1.442695, %v448_v20 }
 0x112   :  { %v1866_v4 = vmul.f32 -1.442695, %v447_v52 }
 0x113   :  { %2408 = vpow2.f32 %v1865_v63 }
 0x114   :  { %2410 = vpow2.f32 %v1866_v4 }
 0x115   :  { %2412 = vtanh.f32 %v449_v56 }
 0x116   :  { %2414 = vpow2.f32 %v1867_v9 }
 0x11d   :  { %v2409_v16 = vpop.eup %2408 }
 0x11e   :  { %v459_v22 = vadd.f32 1.0, %v2409_v16  ;;  %v2411_v28 = vpop.eup %2410 }
 0x11f   :  { %v460_v39 = vadd.f32 1.0, %v2411_v28  ;;  %v2413_v43 = vpop.eup %2412 }
 0x120   :  { %2416 = vrcp.f32 %v459_v22  ;;  %v2415_v48 = vpop.eup %2414 }
 0x121   :  { %2418 = vrcp.f32 %v460_v39  ;;  %v461_v63 = vadd.f32 1.0, %v2415_v48 }
 0x123   :  { %2420 = vrcp.f32 %v461_v63 }
 0x12a   :  { %v2417_v59 = vpop.eup %2416 }
 0x12b   :  { %v470_v11 = vmul.f32 %v2417_v59, %v2413_v43  ;;  %v2419_v52 = vpop.eup %2418 }
 0x12c   :  { %v469_v40 = vmul.f32 0.0, %v2419_v52 }
 0x12d   :  { %v2421_v17 = vpop.eup %2420 }
 0x12e   :  { %v2811_v60 = vadd.f32 %v470_v11, %v469_v40 }
 0x130   :  { %2422 = vtanh.f32 %v2811_v60 }
 0x13a   :  { %v2423_v51 = vpop.eup %2422 }
 0x13b   :  { %v2814_v4 = vmul.f32 %v2423_v51, %v2421_v17 }
 0x13d   :  { %545 = vmatmul.mubr.f32.vlgmr.msra.gmra.mrb[6].mxu0 %v2814_v4  ;;  %616 = vmatmul.mubr.f32.vlgmr.msra.gmra.mrb[6].mxu1 %v2814_v4 }
 0x13e   :  { %2021 = vmatpush1.bf16.msra.mxu0 %v2631_v15  ;;  %2053 = vmatpush1.bf16.msra.mxu1 %v2635_v19 }
 0x13f   :  { %2023 = vmatprep.subr.bf16.mxu0 %v2639_v23  ;;  %2055 = vmatprep.subr.bf16.mxu1 %v2641_v24 }
 0x140   :  { %741 = vmatprep.mubr.f32.mxu0 %v2563_v1  ;;  %812 = vmatprep.mubr.f32.mxu1 %v2563_v1 }
 0x142   :  { %2025 = vmatpush1.bf16.msra.mxu0 %v2647_v31  ;;  %2057 = vmatpush1.bf16.msra.mxu1 %v2649_v32 }
 0x143   :  { %2027 = vmatprep.subr.bf16.mxu0 %v2653_v36  ;;  %2059 = vmatprep.subr.bf16.mxu1 %v2655_v37 }
 0x146   :  { %2029 = vmatpush1.bf16.msra.mxu0 %v2661_v45  ;;  %2061 = vmatpush1.bf16.msra.mxu1 %v2663_v46 }
 0x147   :  { %2031 = vmatprep.subr.bf16.mxu0 %v2667_v49  ;;  %2063 = vmatprep.subr.bf16.mxu1 %v2669_v50 }
 0x14a   :  { %2033 = vmatpush1.bf16.msra.mxu0 %v2673_v57  ;;  %2065 = vmatpush1.bf16.msra.mxu1 %v2675_v58 }
 0x14b   :  { %2035 = vmatprep.subr.bf16.mxu0 %v2679_v61  ;;  %2067 = vmatprep.subr.bf16.mxu1 %v2681_v62 }
 0x14e   :  { %2037 = vmatpush1.bf16.msra.mxu0 %v2685_v6  ;;  %2069 = vmatpush1.bf16.msra.mxu1 %v2687_v7 }
 0x14f   :  { %2039 = vmatprep.subr.bf16.mxu0 %v2694_v12  ;;  %2071 = vmatprep.subr.bf16.mxu1 %v2696_v13 }
 0x152   :  { %2041 = vmatpush1.bf16.msra.mxu0 %v2704_v25  ;;  %2073 = vmatpush1.bf16.msra.mxu1 %v2706_v26 }
 0x153   :  { %2043 = vmatprep.subr.bf16.mxu0 %v2710_v29  ;;  %2075 = vmatprep.subr.bf16.mxu1 %v2712_v30 }
 0x156   :  { %2045 = vmatpush1.bf16.msra.mxu0 %v2716_v41  ;;  %2077 = vmatpush1.bf16.msra.mxu1 %v2718_v42 }
 0x157   :  { %2047 = vmatprep.subr.bf16.mxu0 %v2722_v44  ;;  %2079 = vmatprep.subr.bf16.mxu1 %v2724_v47 }
 0x15a   :  { %2049 = vmatpush1.bf16.msra.mxu0 %v2728_v53  ;;  %2081 = vmatpush1.bf16.msra.mxu1 %v2730_v54 }
 0x15b   :  { %2083 = vmatprep.subr.bf16.mxu0 %v2625_v10  ;;  %2115 = vmatprep.subr.bf16.mxu1 %v2629_v14 }
 0x210   :  { %v546_v20 = vpop.f32.mrb[6].mxu0  ;;  %v617_v56 = vpop.f32.mrb[6].mxu1 }
 0x211   :  { %v626_v9 = vrot.slane %v546_v20, 6  ;;  %v548_v16 = vpop.f32.mrb[7].mxu0  ;;  %v619_v22 = vpop.f32.mrb[7].mxu1  ;;  %v628_v11 = vrot.slane %v617_v56, 6  ;;  %v658_v56 = vrot.slane %v2811_v60, 6 }
 0x212   :  { %v627_v28 = vrot.slane %v548_v16, 6  ;;  %v629_v52 = vrot.slane %v619_v22, 6 }
 0x213   :  { %v634_v39 = vadd.f32 %v626_v9, %v2799_v35  ;;  %v636_v63 = vadd.f32 %v628_v11, %v2805_v18 }
 0x214   :  { %v635_v43 = vadd.f32 %v627_v28, %v2801_v38  ;;  %v637_v40 = vadd.f32 %v629_v52, %v2808_v55  ;;  %v2863_v52 = vld [vmem:[%s3117_s4] sm:$0xff] }
 0x215   :  { %v1868_v48 = vmul.f32 -1.442695, %v634_v39  ;;  %v1870_v17 = vmul.f32 -1.442695, %v636_v63  ;;  %v668_v63 = vrot.slane %v2863_v52, %v116_v5 }
 0x216   :  { %v1869_v59 = vmul.f32 -1.442695, %v635_v43 }
 0x217   :  { %2424 = vpow2.f32 %v1868_v48 }
 0x218   :  { %2426 = vpow2.f32 %v1869_v59 }
 0x219   :  { %2428 = vtanh.f32 %v637_v40  ;;  %v477_v40 = vrot.slane %v2863_v52, %v112_v2 }
 0x21a   :  { %2430 = vpow2.f32 %v1870_v17 }
 0x221   :  { %v2425_v51 = vpop.eup %2424 }
 0x222   :  { %v647_v20 = vadd.f32 1.0, %v2425_v51  ;;  %v2427_v8 = vpop.eup %2426 }
 0x223   :  { %v648_v9 = vadd.f32 1.0, %v2427_v8  ;;  %v2429_v16 = vpop.eup %2428 }
 0x224   :  { %2432 = vrcp.f32 %v647_v20  ;;  %v2431_v28 = vpop.eup %2430 }
 0x225   :  { %2434 = vrcp.f32 %v648_v9  ;;  %v649_v48 = vadd.f32 1.0, %v2431_v28  ;;  %v478_v9 = vmul.f32 %v477_v40, %v2814_v4 }
 0x227   :  { %2436 = vrcp.f32 %v649_v48 }
 0x22e   :  { %v2433_v39 = vpop.eup %2432 }
 0x22f   :  { %v661_v43 = vmul.f32 %v2433_v39, %v2429_v16  ;;  %v2435_v22 = vpop.eup %2434 }
 0x230   :  { %v660_v59 = vmul.f32 %v2435_v22, %v658_v56 }
 0x231   :  { %v2437_v8 = vpop.eup %2436 }
 0x232   :  { %v2857_v11 = vadd.f32 %v661_v43, %v660_v59 }
 0x234   :  { %2438 = vtanh.f32 %v2857_v11 }
 0x23e   :  { %v2439_v60 = vpop.eup %2438 }
 0x23f   :  { %v664_v17 = vmul.f32 %v2439_v60, %v2437_v8 }
 0x241   :  { %v669_v51 = vmul.f32 %v668_v63, %v664_v17  ;;  %v675_v20 = vrot.slane %v664_v17, 2 }
 0x243   :  { %v671_v16 = vrot.slane %v669_v51, 2  ;;  %742 = vmatmul.mubr.f32.vlgmr.msra.gmra.mrb[8].mxu0 %v675_v20  ;;  %813 = vmatmul.mubr.f32.vlgmr.msra.gmra.mrb[8].mxu1 %v675_v20 }
 0x244   :  { %2085 = vmatpush1.bf16.msra.mxu0 %v2631_v15  ;;  %2117 = vmatpush1.bf16.msra.mxu1 %v2635_v19 }
 0x245   :  { %2087 = vmatprep.subr.bf16.mxu0 %v2639_v23  ;;  %2119 = vmatprep.subr.bf16.mxu1 %v2641_v24  ;;  %v2876_v5 = vadd.f32 %v671_v16, %v478_v9 }
 0x246   :  { %938 = vmatprep.mubr.f32.mxu0 %v2563_v1  ;;  %1009 = vmatprep.mubr.f32.mxu1 %v2563_v1 }
 0x248   :  { %2089 = vmatpush1.bf16.msra.mxu0 %v2647_v31  ;;  %2121 = vmatpush1.bf16.msra.mxu1 %v2649_v32 }
 0x249   :  { %2091 = vmatprep.subr.bf16.mxu0 %v2653_v36  ;;  %2123 = vmatprep.subr.bf16.mxu1 %v2655_v37 }
 0x24c   :  { %2093 = vmatpush1.bf16.msra.mxu0 %v2661_v45  ;;  %2125 = vmatpush1.bf16.msra.mxu1 %v2663_v46 }
 0x24d   :  { %2095 = vmatprep.subr.bf16.mxu0 %v2667_v49  ;;  %2127 = vmatprep.subr.bf16.mxu1 %v2669_v50 }
 0x250   :  { %2097 = vmatpush1.bf16.msra.mxu0 %v2673_v57  ;;  %2129 = vmatpush1.bf16.msra.mxu1 %v2675_v58 }
 0x251   :  { %2099 = vmatprep.subr.bf16.mxu0 %v2679_v61  ;;  %2131 = vmatprep.subr.bf16.mxu1 %v2681_v62 }
 0x254   :  { %2101 = vmatpush1.bf16.msra.mxu0 %v2685_v6  ;;  %2133 = vmatpush1.bf16.msra.mxu1 %v2687_v7 }
 0x255   :  { %2103 = vmatprep.subr.bf16.mxu0 %v2694_v12  ;;  %2135 = vmatprep.subr.bf16.mxu1 %v2696_v13 }
 0x258   :  { %2105 = vmatpush1.bf16.msra.mxu0 %v2704_v25  ;;  %2137 = vmatpush1.bf16.msra.mxu1 %v2706_v26 }
 0x259   :  { %2107 = vmatprep.subr.bf16.mxu0 %v2710_v29  ;;  %2139 = vmatprep.subr.bf16.mxu1 %v2712_v30 }
 0x25c   :  { %2109 = vmatpush1.bf16.msra.mxu0 %v2716_v41  ;;  %2141 = vmatpush1.bf16.msra.mxu1 %v2718_v42 }
 0x25d   :  { %2111 = vmatprep.subr.bf16.mxu0 %v2722_v44  ;;  %2143 = vmatprep.subr.bf16.mxu1 %v2724_v47 }
 0x260   :  { %2113 = vmatpush1.bf16.msra.mxu0 %v2728_v53  ;;  %2145 = vmatpush1.bf16.msra.mxu1 %v2730_v54 }
 0x261   :  { %2147 = vmatprep.subr.bf16.mxu0 %v2625_v10  ;;  %2179 = vmatprep.subr.bf16.mxu1 %v2629_v14 }
 0x316   :  { %v743_v2 = vpop.f32.mrb[8].mxu0  ;;  %v814_v4 = vpop.f32.mrb[8].mxu1 }
 0x317   :  { %v823_v28 = vrot.slane %v743_v2, 4  ;;  %v745_v39 = vpop.f32.mrb[9].mxu0  ;;  %v816_v56 = vpop.f32.mrb[9].mxu1  ;;  %v825_v63 = vrot.slane %v814_v4, 4  ;;  %v855_v4 = vrot.slane %v2857_v11, 6 }
 0x318   :  { %v824_v43 = vrot.slane %v745_v39, 4  ;;  %v826_v60 = vrot.slane %v816_v56, 4 }
 0x319   :  { %v831_v22 = vadd.f32 %v823_v28, %v2799_v35  ;;  %v833_v40 = vadd.f32 %v825_v63, %v2805_v18 }
 0x31a   :  { %v832_v48 = vadd.f32 %v824_v43, %v2801_v38  ;;  %v834_v17 = vadd.f32 %v826_v60, %v2808_v55  ;;  %v865_v60 = vrot.slane %v2863_v52, %v120_v3 }
 0x31b   :  { %v1871_v59 = vmul.f32 -1.442695, %v831_v22  ;;  %v1873_v51 = vmul.f32 -1.442695, %v833_v40 }
 0x31c   :  { %v1872_v8 = vmul.f32 -1.442695, %v832_v48 }
 0x31d   :  { %2440 = vpow2.f32 %v1871_v59 }
 0x31e   :  { %2442 = vpow2.f32 %v1872_v8 }
 0x31f   :  { %2444 = vtanh.f32 %v834_v17 }
 0x320   :  { %2446 = vpow2.f32 %v1873_v51 }
 0x327   :  { %v2441_v20 = vpop.eup %2440 }
 0x328   :  { %v844_v9 = vadd.f32 1.0, %v2441_v20  ;;  %v2443_v16 = vpop.eup %2442 }
 0x329   :  { %v845_v2 = vadd.f32 1.0, %v2443_v16  ;;  %v2445_v28 = vpop.eup %2444 }
 0x32a   :  { %2448 = vrcp.f32 %v844_v9  ;;  %v2447_v39 = vpop.eup %2446 }
 0x32b   :  { %2450 = vrcp.f32 %v845_v2  ;;  %v846_v48 = vadd.f32 1.0, %v2447_v39 }
 0x32d   :  { %2452 = vrcp.f32 %v846_v48 }
 0x334   :  { %v2449_v43 = vpop.eup %2448 }
 0x335   :  { %v858_v22 = vmul.f32 %v2449_v43, %v2445_v28  ;;  %v2451_v56 = vpop.eup %2450 }
 0x336   :  { %v857_v59 = vmul.f32 %v2451_v56, %v855_v4 }
 0x337   :  { %v2453_v63 = vpop.eup %2452 }
 0x338   :  { %v2913_v8 = vadd.f32 %v858_v22, %v857_v59 }
 0x33a   :  { %2454 = vtanh.f32 %v2913_v8 }
 0x344   :  { %v2455_v40 = vpop.eup %2454 }
 0x345   :  { %v861_v17 = vmul.f32 %v2455_v40, %v2453_v63 }
 0x347   :  { %v866_v51 = vmul.f32 %v865_v60, %v861_v17  ;;  %v872_v20 = vrot.slane %v861_v17, 4 }
 0x349   :  { %v868_v9 = vrot.slane %v866_v51, 4  ;;  %939 = vmatmul.mubr.f32.vlgmr.msra.gmra.mrb[10].mxu0 %v872_v20  ;;  %1010 = vmatmul.mubr.f32.vlgmr.msra.gmra.mrb[10].mxu1 %v872_v20 }
 0x34a   :  { %2149 = vmatpush1.bf16.msra.mxu0 %v2631_v15  ;;  %2181 = vmatpush1.bf16.msra.mxu1 %v2635_v19 }
 0x34b   :  { %2151 = vmatprep.subr.bf16.mxu0 %v2639_v23  ;;  %2183 = vmatprep.subr.bf16.mxu1 %v2641_v24  ;;  %v2924_v11 = vadd.f32 %v868_v9, %v2876_v5 }
 0x34c   :  { %1135 = vmatprep.mubr.f32.mxu0 %v2563_v1  ;;  %1206 = vmatprep.mubr.f32.mxu1 %v2563_v1 }
 0x34e   :  { %2153 = vmatpush1.bf16.msra.mxu0 %v2647_v31  ;;  %2185 = vmatpush1.bf16.msra.mxu1 %v2649_v32 }
 0x34f   :  { %2155 = vmatprep.subr.bf16.mxu0 %v2653_v36  ;;  %2187 = vmatprep.subr.bf16.mxu1 %v2655_v37 }
 0x352   :  { %2157 = vmatpush1.bf16.msra.mxu0 %v2661_v45  ;;  %2189 = vmatpush1.bf16.msra.mxu1 %v2663_v46 }
 0x353   :  { %2159 = vmatprep.subr.bf16.mxu0 %v2667_v49  ;;  %2191 = vmatprep.subr.bf16.mxu1 %v2669_v50 }
 0x356   :  { %2161 = vmatpush1.bf16.msra.mxu0 %v2673_v57  ;;  %2193 = vmatpush1.bf16.msra.mxu1 %v2675_v58 }
 0x357   :  { %2163 = vmatprep.subr.bf16.mxu0 %v2679_v61  ;;  %2195 = vmatprep.subr.bf16.mxu1 %v2681_v62 }
 0x35a   :  { %2165 = vmatpush1.bf16.msra.mxu0 %v2685_v6  ;;  %2197 = vmatpush1.bf16.msra.mxu1 %v2687_v7 }
 0x35b   :  { %2167 = vmatprep.subr.bf16.mxu0 %v2694_v12  ;;  %2199 = vmatprep.subr.bf16.mxu1 %v2696_v13 }
 0x35e   :  { %2169 = vmatpush1.bf16.msra.mxu0 %v2704_v25  ;;  %2201 = vmatpush1.bf16.msra.mxu1 %v2706_v26 }
 0x35f   :  { %2171 = vmatprep.subr.bf16.mxu0 %v2710_v29  ;;  %2203 = vmatprep.subr.bf16.mxu1 %v2712_v30 }
 0x362   :  { %2173 = vmatpush1.bf16.msra.mxu0 %v2716_v41  ;;  %2205 = vmatpush1.bf16.msra.mxu1 %v2718_v42 }
 0x363   :  { %2175 = vmatprep.subr.bf16.mxu0 %v2722_v44  ;;  %2207 = vmatprep.subr.bf16.mxu1 %v2724_v47 }
 0x366   :  { %2177 = vmatpush1.bf16.msra.mxu0 %v2728_v53  ;;  %2209 = vmatpush1.bf16.msra.mxu1 %v2730_v54 }
 0x367   :  { %2211 = vmatprep.subr.bf16.mxu0 %v2625_v10  ;;  %2243 = vmatprep.subr.bf16.mxu1 %v2629_v14 }
 0x41c   :  { %v940_v3 = vpop.f32.mrb[10].mxu0  ;;  %v1011_v5 = vpop.f32.mrb[10].mxu1 }
 0x41d   :  { %v1020_v16 = vrot.slane %v940_v3, 2  ;;  %v942_v2 = vpop.f32.mrb[11].mxu0  ;;  %v1013_v28 = vpop.f32.mrb[11].mxu1  ;;  %v1022_v48 = vrot.slane %v1011_v5, 2  ;;  %v1052_v5 = vrot.slane %v2913_v8, 6 }
 0x41e   :  { %v1021_v39 = vrot.slane %v942_v2, 2  ;;  %v1023_v59 = vrot.slane %v1013_v28, 2 }
 0x41f   :  { %v1028_v43 = vadd.f32 %v1020_v16, %v2799_v35  ;;  %v1030_v63 = vadd.f32 %v1022_v48, %v2805_v18 }
 0x420   :  { %v1029_v4 = vadd.f32 %v1021_v39, %v2801_v38  ;;  %v1031_v60 = vadd.f32 %v1023_v59, %v2808_v55 }
 0x421   :  { %v1874_v22 = vmul.f32 -1.442695, %v1028_v43  ;;  %v1876_v40 = vmul.f32 -1.442695, %v1030_v63  ;;  %v3121_v43 = vsub.s32 3, %v2774_v0 }
 0x422   :  { %v1875_v56 = vmul.f32 -1.442695, %v1029_v4 }
 0x423   :  { %2456 = vpow2.f32 %v1874_v22  ;;  %v1062_v4 = vrot.slane %v2863_v52, %v3121_v43 }
 0x424   :  { %2458 = vpow2.f32 %v1875_v56 }
 0x425   :  { %2460 = vtanh.f32 %v1031_v60 }
 0x426   :  { %2462 = vpow2.f32 %v1876_v40 }
 0x42d   :  { %v2457_v17 = vpop.eup %2456 }
 0x42e   :  { %v1041_v51 = vadd.f32 1.0, %v2457_v17  ;;  %v2459_v20 = vpop.eup %2458 }
 0x42f   :  { %v1042_v35 = vadd.f32 1.0, %v2459_v20  ;;  %v2461_v38 = vpop.eup %2460 }
 0x430   :  { %2464 = vrcp.f32 %v1041_v51  ;;  %v2463_v9 = vpop.eup %2462 }
 0x431   :  { %2466 = vrcp.f32 %v1042_v35  ;;  %v1043_v28 = vadd.f32 1.0, %v2463_v9 }
 0x433   :  { %2468 = vrcp.f32 %v1043_v28 }
 0x43a   :  { %v2465_v3 = vpop.eup %2464 }
 0x43b   :  { %v1055_v16 = vmul.f32 %v2465_v3, %v2461_v38  ;;  %v2467_v2 = vpop.eup %2466 }
 0x43c   :  { %v1054_v18 = vmul.f32 %v2467_v2, %v1052_v5 }
 0x43d   :  { %v2469_v55 = vpop.eup %2468 }
 0x43e   :  { %v2961_v39 = vadd.f32 %v1055_v16, %v1054_v18 }
 0x440   :  { %2470 = vtanh.f32 %v2961_v39 }
 0x44a   :  { %v2471_v22 = vpop.eup %2470 }
 0x44b   :  { %v1058_v56 = vmul.f32 %v2471_v22, %v2469_v55  ;;  %v1237_v22 = vrot.slane %v2961_v39, 6 }
 0x44d   :  { %v1063_v48 = vmul.f32 %v1062_v4, %v1058_v56  ;;  %v1069_v59 = vrot.slane %v1058_v56, 6 }
 0x44f   :  { %1136 = vmatmul.mubr.f32.vlgmr.msra.gmra.mrb[12].mxu0 %v1069_v59  ;;  %1207 = vmatmul.mubr.f32.vlgmr.msra.gmra.mrb[12].mxu1 %v1069_v59  ;;  %v1065_v8 = vrot.slane %v1063_v48, 6 }
 0x450   :  { %2213 = vmatpush1.bf16.msra.mxu0 %v2631_v15  ;;  %2245 = vmatpush1.bf16.msra.mxu1 %v2635_v19 }
 0x451   :  { %2215 = vmatprep.subr.bf16.mxu0 %v2639_v23  ;;  %2247 = vmatprep.subr.bf16.mxu1 %v2641_v24  ;;  %v2972_v63 = vadd.f32 %v1065_v8, %v2924_v11 }
 0x452   :  { %1314 = vmatprep.mubr.f32.mxu0 %v2563_v1  ;;  %1385 = vmatprep.mubr.f32.mxu1 %v2563_v1 }
 0x454   :  { %2217 = vmatpush1.bf16.msra.mxu0 %v2647_v31  ;;  %2249 = vmatpush1.bf16.msra.mxu1 %v2649_v32 }
 0x455   :  { %2219 = vmatprep.subr.bf16.mxu0 %v2653_v36  ;;  %2251 = vmatprep.subr.bf16.mxu1 %v2655_v37 }
 0x458   :  { %2221 = vmatpush1.bf16.msra.mxu0 %v2661_v45  ;;  %2253 = vmatpush1.bf16.msra.mxu1 %v2663_v46 }
 0x459   :  { %2223 = vmatprep.subr.bf16.mxu0 %v2667_v49  ;;  %2255 = vmatprep.subr.bf16.mxu1 %v2669_v50 }
 0x45c   :  { %2225 = vmatpush1.bf16.msra.mxu0 %v2673_v57  ;;  %2257 = vmatpush1.bf16.msra.mxu1 %v2675_v58 }
 0x45d   :  { %2227 = vmatprep.subr.bf16.mxu0 %v2679_v61  ;;  %2259 = vmatprep.subr.bf16.mxu1 %v2681_v62 }
 0x460   :  { %2229 = vmatpush1.bf16.msra.mxu0 %v2685_v6  ;;  %2261 = vmatpush1.bf16.msra.mxu1 %v2687_v7 }
 0x461   :  { %2231 = vmatprep.subr.bf16.mxu0 %v2694_v12  ;;  %2263 = vmatprep.subr.bf16.mxu1 %v2696_v13 }
 0x464   :  { %2233 = vmatpush1.bf16.msra.mxu0 %v2704_v25  ;;  %2265 = vmatpush1.bf16.msra.mxu1 %v2706_v26 }
 0x465   :  { %2235 = vmatprep.subr.bf16.mxu0 %v2710_v29  ;;  %2267 = vmatprep.subr.bf16.mxu1 %v2712_v30 }
 0x468   :  { %2237 = vmatpush1.bf16.msra.mxu0 %v2716_v41  ;;  %2269 = vmatpush1.bf16.msra.mxu1 %v2718_v42 }
 0x469   :  { %2239 = vmatprep.subr.bf16.mxu0 %v2722_v44  ;;  %2271 = vmatprep.subr.bf16.mxu1 %v2724_v47 }
 0x46c   :  { %2241 = vmatpush1.bf16.msra.mxu0 %v2728_v53  ;;  %2273 = vmatpush1.bf16.msra.mxu1 %v2730_v54 }
 0x46d   :  { %2275 = vmatprep.subr.bf16.mxu0 %v2625_v10  ;;  %2307 = vmatprep.subr.bf16.mxu1 %v2629_v14 }
 0x522   :  { %v1137_v11 = vpop.f32.mrb[12].mxu0  ;;  %v1208_v60 = vpop.f32.mrb[12].mxu1 }
 0x523   :  { %v1213_v40 = vadd.f32 %v1137_v11, %v2791_v21  ;;  %v1139_v17 = vpop.f32.mrb[13].mxu0  ;;  %v1210_v51 = vpop.f32.mrb[13].mxu1  ;;  %v1215_v9 = vadd.f32 %v1208_v60, %v2793_v27  ;;  %v1246_v60 = vsub.s32 4, %v2774_v0 }
 0x524   :  { %v1214_v20 = vadd.f32 %v1139_v17, %v2795_v33  ;;  %v1216_v3 = vadd.f32 %v1210_v51, %v2797_v34 }
 0x525   :  { %v1877_v35 = vmul.f32 -1.442695, %v1213_v40  ;;  %v1879_v5 = vmul.f32 -1.442695, %v1215_v9  ;;  %v1247_v17 = vrot.slane %v2863_v52, %v1246_v60 }
 0x526   :  { %v1878_v38 = vmul.f32 -1.442695, %v1214_v20 }
 0x527   :  { %2472 = vpow2.f32 %v1877_v35 }
 0x528   :  { %2474 = vpow2.f32 %v1878_v38 }
 0x529   :  { %2476 = vtanh.f32 %v1216_v3 }
 0x52a   :  { %2478 = vpow2.f32 %v1879_v5 }
 0x531   :  { %v2473_v16 = vpop.eup %2472 }
 0x532   :  { %v1226_v2 = vadd.f32 1.0, %v2473_v16  ;;  %v2475_v28 = vpop.eup %2474 }
 0x533   :  { %v1227_v18 = vadd.f32 1.0, %v2475_v28  ;;  %v2477_v55 = vpop.eup %2476 }
 0x534   :  { %2480 = vrcp.f32 %v1226_v2  ;;  %v2479_v43 = vpop.eup %2478 }
 0x535   :  { %2482 = vrcp.f32 %v1227_v18  ;;  %v1228_v59 = vadd.f32 1.0, %v2479_v43 }
 0x537   :  { %2484 = vrcp.f32 %v1228_v59 }
 0x53e   :  { %v2481_v4 = vpop.eup %2480 }
 0x53f   :  { %v1240_v56 = vmul.f32 %v2481_v4, %v2477_v55  ;;  %v2483_v48 = vpop.eup %2482 }
 0x540   :  { %v1239_v8 = vmul.f32 %v2483_v48, %v1237_v22 }
 0x541   :  { %v2485_v40 = vpop.eup %2484 }
 0x542   :  { %v3009_v11 = vadd.f32 %v1240_v56, %v1239_v8 }
 0x544   :  { %2486 = vtanh.f32 %v3009_v11 }
 0x54e   :  { %v2487_v51 = vpop.eup %2486 }
 0x54f   :  { %v1243_v20 = vmul.f32 %v2487_v51, %v2485_v40  ;;  %v1428_v51 = vrot.slane %v3009_v11, 6 }
 0x551   :  { %1315 = vmatmul.mubr.f32.vlgmr.msra.gmra.mrb[14].mxu0 %v1243_v20  ;;  %1386 = vmatmul.mubr.f32.vlgmr.msra.gmra.mrb[14].mxu1 %v1243_v20  ;;  %v1248_v35 = vmul.f32 %v1247_v17, %v1243_v20 }
 0x552   :  { %2277 = vmatpush1.bf16.msra.mxu0 %v2631_v15  ;;  %2309 = vmatpush1.bf16.msra.mxu1 %v2635_v19 }
 0x553   :  { %2279 = vmatprep.subr.bf16.mxu0 %v2639_v23  ;;  %2311 = vmatprep.subr.bf16.mxu1 %v2641_v24  ;;  %v3019_v39 = vadd.f32 %v1248_v35, %v2972_v63 }
 0x554   :  { %1511 = vmatprep.mubr.f32.mxu0 %v2563_v1  ;;  %1582 = vmatprep.mubr.f32.mxu1 %v2563_v1 }
 0x556   :  { %2281 = vmatpush1.bf16.msra.mxu0 %v2647_v31  ;;  %2313 = vmatpush1.bf16.msra.mxu1 %v2649_v32 }
 0x557   :  { %2283 = vmatprep.subr.bf16.mxu0 %v2653_v36  ;;  %2315 = vmatprep.subr.bf16.mxu1 %v2655_v37 }
 0x55a   :  { %2285 = vmatpush1.bf16.msra.mxu0 %v2661_v45  ;;  %2317 = vmatpush1.bf16.msra.mxu1 %v2663_v46 }
 0x55b   :  { %2287 = vmatprep.subr.bf16.mxu0 %v2667_v49  ;;  %2319 = vmatprep.subr.bf16.mxu1 %v2669_v50 }
 0x55e   :  { %2289 = vmatpush1.bf16.msra.mxu0 %v2673_v57  ;;  %2321 = vmatpush1.bf16.msra.mxu1 %v2675_v58 }
 0x55f   :  { %2291 = vmatprep.subr.bf16.mxu0 %v2679_v61  ;;  %2323 = vmatprep.subr.bf16.mxu1 %v2681_v62 }
 0x562   :  { %2293 = vmatpush1.bf16.msra.mxu0 %v2685_v6  ;;  %2325 = vmatpush1.bf16.msra.mxu1 %v2687_v7 }
 0x563   :  { %2295 = vmatprep.subr.bf16.mxu0 %v2694_v12  ;;  %2327 = vmatprep.subr.bf16.mxu1 %v2696_v13 }
 0x566   :  { %2297 = vmatpush1.bf16.msra.mxu0 %v2704_v25  ;;  %2329 = vmatpush1.bf16.msra.mxu1 %v2706_v26 }
 0x567   :  { %2299 = vmatprep.subr.bf16.mxu0 %v2710_v29  ;;  %2331 = vmatprep.subr.bf16.mxu1 %v2712_v30 }
 0x56a   :  { %2301 = vmatpush1.bf16.msra.mxu0 %v2716_v41  ;;  %2333 = vmatpush1.bf16.msra.mxu1 %v2718_v42 }
 0x56b   :  { %2303 = vmatprep.subr.bf16.mxu0 %v2722_v44  ;;  %2335 = vmatprep.subr.bf16.mxu1 %v2724_v47 }
 0x56e   :  { %2305 = vmatpush1.bf16.msra.mxu0 %v2728_v53  ;;  %2337 = vmatpush1.bf16.msra.mxu1 %v2730_v54 }
 0x56f   :  { %2339 = vmatprep.subr.bf16.mxu0 %v2625_v10  ;;  %2371 = vmatprep.subr.bf16.mxu1 %v2629_v14 }
 0x624   :  { %v1316_v63 = vpop.f32.mrb[14].mxu0  ;;  %v1387_v38 = vpop.f32.mrb[14].mxu1 }
 0x625   :  { %v1396_v9 = vrot.slane %v1316_v63, 6  ;;  %v1318_v3 = vpop.f32.mrb[15].mxu0  ;;  %v1389_v5 = vpop.f32.mrb[15].mxu1  ;;  %v1398_v43 = vrot.slane %v1387_v38, 6 }
 0x626   :  { %v1397_v16 = vrot.slane %v1318_v3, 6  ;;  %v1399_v4 = vrot.slane %v1389_v5, 6  ;;  %v1437_v3 = vsub.s32 5, %v2774_v0 }
 0x627   :  { %v1404_v2 = vadd.f32 %v1396_v9, %v2791_v21  ;;  %v1406_v10 = vadd.f32 %v1398_v43, %v2793_v27 }
 0x628   :  { %v1405_v28 = vadd.f32 %v1397_v16, %v2795_v33  ;;  %v1407_v14 = vadd.f32 %v1399_v4, %v2797_v34  ;;  %v1438_v16 = vrot.slane %v2863_v52, %v1437_v3 }
 0x629   :  { %v1880_v18 = vmul.f32 -1.442695, %v1404_v2  ;;  %v1882_v22 = vmul.f32 -1.442695, %v1406_v10 }
 0x62a   :  { %v1881_v55 = vmul.f32 -1.442695, %v1405_v28 }
 0x62b   :  { %2488 = vpow2.f32 %v1880_v18 }
 0x62c   :  { %2490 = vpow2.f32 %v1881_v55 }
 0x62d   :  { %2492 = vtanh.f32 %v1407_v14 }
 0x62e   :  { %2494 = vpow2.f32 %v1882_v22 }
 0x635   :  { %v2489_v56 = vpop.eup %2488 }
 0x636   :  { %v1417_v48 = vadd.f32 1.0, %v2489_v56  ;;  %v2491_v59 = vpop.eup %2490 }
 0x637   :  { %v1418_v8 = vadd.f32 1.0, %v2491_v59  ;;  %v2493_v60 = vpop.eup %2492 }
 0x638   :  { %2496 = vrcp.f32 %v1417_v48  ;;  %v2495_v40 = vpop.eup %2494 }
 0x639   :  { %2498 = vrcp.f32 %v1418_v8  ;;  %v1419_v63 = vadd.f32 1.0, %v2495_v40 }
 0x63b   :  { %2500 = vrcp.f32 %v1419_v63 }
 0x642   :  { %v2497_v17 = vpop.eup %2496 }
 0x643   :  { %v1431_v20 = vmul.f32 %v2497_v17, %v2493_v60  ;;  %v2499_v35 = vpop.eup %2498 }
 0x644   :  { %v1430_v38 = vmul.f32 %v2499_v35, %v1428_v51 }
 0x645   :  { %v2501_v5 = vpop.eup %2500 }
 0x646   :  { %v3056_v9 = vadd.f32 %v1431_v20, %v1430_v38 }
 0x648   :  { %2502 = vtanh.f32 %v3056_v9 }
 0x652   :  { %v2503_v2 = vpop.eup %2502 }
 0x653   :  { %v1434_v28 = vmul.f32 %v2503_v2, %v2501_v5 }
 0x655   :  { %v1445_v18 = vrot.slane %v1434_v28, 2  ;;  %v1439_v55 = vmul.f32 %v1438_v16, %v1434_v28 }
 0x657   :  { %1512 = vmatmul.mubr.f32.vlgmr.msra.gmra.mrb[16].mxu0 %v1445_v18  ;;  %1583 = vmatmul.mubr.f32.vlgmr.msra.gmra.mrb[16].mxu1 %v1445_v18  ;;  %v1441_v11 = vrot.slane %v1439_v55, 2 }
 0x658   :  { %2341 = vmatpush1.bf16.msra.mxu0 %v2631_v15  ;;  %2373 = vmatpush1.bf16.msra.mxu1 %v2635_v19 }
 0x659   :  { %2343 = vmatprep.subr.bf16.mxu0 %v2639_v23  ;;  %2375 = vmatprep.subr.bf16.mxu1 %v2641_v24  ;;  %v3066_v43 = vadd.f32 %v1441_v11, %v3019_v39 }
 0x65a   :  { %1708 = vmatprep.mubr.f32.mxu0 %v2563_v1  ;;  %1779 = vmatprep.mubr.f32.mxu1 %v2563_v1 }
 0x65c   :  { %2345 = vmatpush1.bf16.msra.mxu0 %v2647_v31  ;;  %2377 = vmatpush1.bf16.msra.mxu1 %v2649_v32 }
 0x65d   :  { %2347 = vmatprep.subr.bf16.mxu0 %v2653_v36  ;;  %2379 = vmatprep.subr.bf16.mxu1 %v2655_v37 }
 0x660   :  { %2349 = vmatpush1.bf16.msra.mxu0 %v2661_v45  ;;  %2381 = vmatpush1.bf16.msra.mxu1 %v2663_v46 }
 0x661   :  { %2351 = vmatprep.subr.bf16.mxu0 %v2667_v49  ;;  %2383 = vmatprep.subr.bf16.mxu1 %v2669_v50 }
 0x664   :  { %2353 = vmatpush1.bf16.msra.mxu0 %v2673_v57  ;;  %2385 = vmatpush1.bf16.msra.mxu1 %v2675_v58 }
 0x665   :  { %2355 = vmatprep.subr.bf16.mxu0 %v2679_v61  ;;  %2387 = vmatprep.subr.bf16.mxu1 %v2681_v62 }
 0x668   :  { %2357 = vmatpush1.bf16.msra.mxu0 %v2685_v6  ;;  %2389 = vmatpush1.bf16.msra.mxu1 %v2687_v7 }
 0x669   :  { %2359 = vmatprep.subr.bf16.mxu0 %v2694_v12  ;;  %2391 = vmatprep.subr.bf16.mxu1 %v2696_v13 }
 0x66c   :  { %2361 = vmatpush1.bf16.msra.mxu0 %v2704_v25  ;;  %2393 = vmatpush1.bf16.msra.mxu1 %v2706_v26  ;;  %v1625_v26 = vrot.slane %v3056_v9, 6 }
 0x66d   :  { %2363 = vmatprep.subr.bf16.mxu0 %v2710_v29  ;;  %2395 = vmatprep.subr.bf16.mxu1 %v2712_v30 }
 0x670   :  { %2365 = vmatpush1.bf16.msra.mxu0 %v2716_v41  ;;  %2397 = vmatpush1.bf16.msra.mxu1 %v2718_v42 }
 0x671   :  { %2367 = vmatprep.subr.bf16.mxu0 %v2722_v44  ;;  %2399 = vmatprep.subr.bf16.mxu1 %v2724_v47  ;;  %v1634_v47 = vsub.s32 6, %v2774_v0 }
 0x674   :  { %2369 = vmatpush1.bf16.msra.mxu0 %v2728_v53  ;;  %2401 = vmatpush1.bf16.msra.mxu1 %v2730_v54  ;;  %v1635_v54 = vrot.slane %v2863_v52, %v1634_v47 }
 0x72a   :  { %v1513_v1 = vpop.f32.mrb[16].mxu0  ;;  %v1584_v15 = vpop.f32.mrb[16].mxu1 }
 0x72b   :  { %v1593_v19 = vrot.slane %v1513_v1, 4  ;;  %v1515_v23 = vpop.f32.mrb[17].mxu0  ;;  %v1586_v24 = vpop.f32.mrb[17].mxu1  ;;  %v1595_v46 = vrot.slane %v1584_v15, 4 }
 0x72c   :  { %v1594_v31 = vrot.slane %v1515_v23, 4  ;;  %v1596_v49 = vrot.slane %v1586_v24, 4 }
 0x72d   :  { %v1601_v32 = vadd.f32 %v1593_v19, %v2791_v21  ;;  %v1603_v50 = vadd.f32 %v1595_v46, %v2793_v27 }
 0x72e   :  { %v1602_v36 = vadd.f32 %v1594_v31, %v2795_v33  ;;  %v1604_v57 = vadd.f32 %v1596_v49, %v2797_v34 }
 0x72f   :  { %v1883_v37 = vmul.f32 -1.442695, %v1601_v32  ;;  %v1885_v58 = vmul.f32 -1.442695, %v1603_v50  ;;  %v1889_v50 = vld [vmem:[#allocation2] ss:$0 sm:$0xff] }
 0x730   :  { %v1884_v45 = vmul.f32 -1.442695, %v1602_v36 }
 0x731   :  { %2504 = vpow2.f32 %v1883_v37 }
 0x732   :  { %2506 = vpow2.f32 %v1884_v45 }
 0x733   :  { %2508 = vtanh.f32 %v1604_v57 }
 0x734   :  { %2510 = vpow2.f32 %v1885_v58 }
 0x73b   :  { %v2505_v61 = vpop.eup %2504 }
 0x73c   :  { %v1614_v62 = vadd.f32 1.0, %v2505_v61  ;;  %v2507_v6 = vpop.eup %2506 }
 0x73d   :  { %v1615_v7 = vadd.f32 1.0, %v2507_v6  ;;  %v2509_v12 = vpop.eup %2508 }
 0x73e   :  { %2512 = vrcp.f32 %v1614_v62  ;;  %v2511_v13 = vpop.eup %2510 }
 0x73f   :  { %2514 = vrcp.f32 %v1615_v7  ;;  %v1616_v41 = vadd.f32 1.0, %v2511_v13 }
 0x741   :  { %2516 = vrcp.f32 %v1616_v41 }
 0x748   :  { %v2513_v25 = vpop.eup %2512 }
 0x749   :  { %v1628_v29 = vmul.f32 %v2513_v25, %v2509_v12  ;;  %v2515_v30 = vpop.eup %2514 }
 0x74a   :  { %v1627_v42 = vmul.f32 %v2515_v30, %v1625_v26 }
 0x74b   :  { %v2517_v53 = vpop.eup %2516 }
 0x74c   :  { %v1629_v44 = vadd.f32 %v1628_v29, %v1627_v42 }
 0x74e   :  { %2518 = vtanh.f32 %v1629_v44 }
 0x758   :  { %v2519_v39 = vpop.eup %2518 }
 0x759   :  { %v1631_v4 = vmul.f32 %v2519_v39, %v2517_v53 }
 0x75b   :  { %v1642_v10 = vrot.slane %v1631_v4, 4  ;;  %v1636_v14 = vmul.f32 %v1635_v54, %v1631_v4 }
 0x75d   :  { %1709 = vmatmul.mubr.f32.vlgmr.msra.gmra.mrb[18].mxu0 %v1642_v10  ;;  %1780 = vmatmul.mubr.f32.vlgmr.msra.gmra.mrb[18].mxu1 %v1642_v10  ;;  %v1638_v22 = vrot.slane %v1636_v14, 4 }
 0x75f   :  { %v1640_v56 = vadd.f32 %v1638_v22, %v3066_v43  ;;  %v1822_v43 = vrot.slane %v1629_v44, 6 }
 0x830   :  { %v1710_v48 = vpop.f32.mrb[18].mxu0  ;;  %v1781_v59 = vpop.f32.mrb[18].mxu1 }
 0x831   :  { %v1790_v8 = vrot.slane %v1710_v48, 2  ;;  %v1712_v60 = vpop.f32.mrb[19].mxu0  ;;  %v1783_v40 = vpop.f32.mrb[19].mxu1  ;;  %v1792_v38 = vrot.slane %v1781_v59, 2 }
 0x832   :  { %v1791_v17 = vrot.slane %v1712_v60, 2  ;;  %v1793_v9 = vrot.slane %v1783_v40, 2 }
 0x833   :  { %v1798_v51 = vadd.f32 %v1790_v8, %v2791_v21  ;;  %v1800_v3 = vadd.f32 %v1792_v38, %v2793_v27 }
 0x834   :  { %v1799_v20 = vadd.f32 %v1791_v17, %v2795_v33  ;;  %v1801_v5 = vadd.f32 %v1793_v9, %v2797_v34  ;;  %v1831_v34 = vsub.s32 7, %v2774_v0 }
 0x835   :  { %v1886_v35 = vmul.f32 -1.442695, %v1798_v51  ;;  %v1888_v16 = vmul.f32 -1.442695, %v1800_v3 }
 0x836   :  { %v1887_v63 = vmul.f32 -1.442695, %v1799_v20  ;;  %v1832_v31 = vrot.slane %v2863_v52, %v1831_v34 }
 0x837   :  { %2520 = vpow2.f32 %v1886_v35 }
 0x838   :  { %2522 = vpow2.f32 %v1887_v63 }
 0x839   :  { %2524 = vtanh.f32 %v1801_v5 }
 0x83a   :  { %2526 = vpow2.f32 %v1888_v16 }
 0x841   :  { %v2521_v2 = vpop.eup %2520 }
 0x842   :  { %v1811_v28 = vadd.f32 1.0, %v2521_v2  ;;  %v2523_v18 = vpop.eup %2522 }
 0x843   :  { %v1812_v21 = vadd.f32 1.0, %v2523_v18  ;;  %v2525_v33 = vpop.eup %2524 }
 0x844   :  { %2528 = vrcp.f32 %v1811_v28  ;;  %v2527_v55 = vpop.eup %2526 }
 0x845   :  { %2530 = vrcp.f32 %v1812_v21  ;;  %v1813_v19 = vadd.f32 1.0, %v2527_v55 }
 0x847   :  { %2532 = vrcp.f32 %v1813_v19 }
 0x84e   :  { %v2529_v11 = vpop.eup %2528 }
 0x84f   :  { %v1825_v1 = vmul.f32 %v2529_v11, %v2525_v33  ;;  %v2531_v15 = vpop.eup %2530 }
 0x850   :  { %v1824_v23 = vmul.f32 %v2531_v15, %v1822_v43 }
 0x851   :  { %v2533_v24 = vpop.eup %2532 }
 0x852   :  { %v1826_v27 = vadd.f32 %v1825_v1, %v1824_v23 }
 0x854   :  { %2534 = vtanh.f32 %v1826_v27 }
 0x85e   :  { %v2535_v32 = vpop.eup %2534 }
 0x85f   :  { %v1828_v36 = vmul.f32 %v2535_v32, %v2533_v24 }
 0x861   :  { %v1833_v37 = vmul.f32 %v1832_v31, %v1828_v36 }
 0x863   :  { %v1835_v45 = vrot.slane %v1833_v37, 6 }
 0x865   :  { %v1837_v46 = vadd.f32 %v1835_v45, %v1640_v56 }
 0x867   :  { %v1839_v49 = vsel %vm1838_vm2, %v1837_v46, 0.0 }
 0x868   :  { %1840 = vadd.xlane.f32.xlu0 %v1839_v49 }
 0x8f5   :  { %v1841_v57 = vpop.xlane.xlu0 %1840 }
 0x8f6   :  { %v1849_v58 = vadd.f32 %v1889_v50, %v1841_v57 }
 0x8f8   :  { %1851 = vst.msk [vmem:[%s3119_s6] sm:$0x3] %vm1850_vm3, %v1849_v58 }
 0x8f9   :  { %1856 = vsyncpa [#allocation4], 1 }

</bundles_post_ra>
